<compile_context>
chip_gen: v6e
topology: v6e:2x2x1
jax: 0.10.0
libtpu: 0.0.40
codegen_flags: <defaults>
</compile_context>

<pallas_src>
import math

import jax
import jax.numpy as jnp
from jax.experimental import pallas as pl
from jax.experimental.pallas import tpu as pltpu


def _round_up(x, m):
    return ((x + m - 1) // m) * m


_VMEM_BUDGET_BYTES = 48 * 1024 * 1024   # explicit per-step budget (v7x: 64 MiB physical)
_VMEM_LIMIT_BYTES = 64 * 1024 * 1024    # scoped VMEM limit handed to Mosaic


# ---------------------------------------------------------------------------
# Stage 1 (once per call): Conv1d(4,1,1) folded into the node-side blocks of
# MLP layer 1.  One lane-dense matmul:
#   proj = node_attr.reshape(N, 4H) @ [Wbig_src | Wbig_tgt] + [b_src | b_tgt]
# and the two (N, 3H) halves are written as rows 0 / 1 of a (2, N, 3H) table.
# ---------------------------------------------------------------------------
def _node_kernel(na_ref, wcat_ref, bcat_ref, tab_ref):
    th = tab_ref.shape[-1]                              # 3H
    proj = jnp.dot(na_ref[...], wcat_ref[...],
                   preferred_element_type=jnp.float32) + bcat_ref[...]
    tab_ref[0, :, :] = proj[:, :th]                     # source-node projections
    tab_ref[1, :, :] = proj[:, th:]                     # target-node projections


# ---------------------------------------------------------------------------
# Stage 2 (tiled over edges): fused one-hot gather over the concatenated
# pre-projected node table + edge-side layer 1 + remaining ReLU MLP layers.
# ---------------------------------------------------------------------------
def _edge_kernel(rc_ref, edge_ref, cat_tab_ref,
                 w1e_ref, b1_ref, w2_ref, b2_ref, w3_ref, b3_ref, out_ref):
    te = rc_ref.shape[0]
    two_n = cat_tab_ref.shape[0]
    n = two_n // 2
    tab_dtype = cat_tab_ref.dtype

    rc = rc_ref[...]                                    # (TE, 2) int32
    r = rc[:, 0:1]                                      # source node ids
    c = rc[:, 1:2] + n                                  # target ids, offset by N
    iota = jax.lax.broadcasted_iota(jnp.int32, (te, two_n), 1)
    oh = ((iota == r) | (iota == c)).astype(tab_dtype)  # (TE, 2N): two 1s per row

    # Fused gather + node-side of layer 1: single MXU pass, K = 2N.
    h = jnp.dot(oh, cat_tab_ref[...], preferred_element_type=jnp.float32)
    # Edge-side of layer 1.
    h = h + jnp.dot(edge_ref[...], w1e_ref[...], preferred_element_type=jnp.float32)
    h = jnp.maximum(h + b1_ref[...], 0.0)               # (TE, 3H)

    h = jnp.dot(h.astype(w2_ref.dtype), w2_ref[...],
                preferred_element_type=jnp.float32) + b2_ref[...]
    h = jnp.maximum(h, 0.0)                             # (TE, 2H)

    h = jnp.dot(h.astype(w3_ref.dtype), w3_ref[...],
                preferred_element_type=jnp.float32) + b3_ref[...]
    h = jnp.maximum(h, 0.0)                             # (TE, H)

    out_ref[...] = h.astype(out_ref.dtype)


def _edge_vmem_estimate(tile_e, n, h, ea, in_item, out_item):
    """Conservative resident-VMEM estimate for one stage-2 grid step.

    Assumes double-buffered constants (i.e. even if Buffered(1) were not honored)
    so the clamp is safe on every chip generation.
    """
    th, twoh, twon = 3 * h, 2 * h, 2 * n
    b = 2 * tile_e * 2 * 4                              # rc tile (double-buffered)
    b += 2 * tile_e * ea * in_item                      # edge-feature tile
    b += 2 * tile_e * h * out_item                      # output tile
    b += 2 * (twon * th + ea * th + th * twoh + twoh * h) * in_item   # table + weights
    b += 2 * (th + twoh + h) * 4                        # biases (f32)
    b += tile_e * twon * in_item                        # one-hot intermediate
    b += tile_e * (th + twoh + h) * 4                   # f32 activations
    return b


def edgeconv_forward(node_attr, edge_input, row, col, params, *,
                     tile_e=512, compute_dtype=jnp.bfloat16,
                     out_dtype=jnp.float32):
    """EdgeConv forward.

    node_attr:  (N, 4, H) f32   (PyTorch Conv1d NCL layout)
    edge_input: (E, Ea)   f32
    row, col:   (E,) int        (edge_index rows)
    Returns (E, H) out_dtype.
    """
    cw, cb, w1, b1, w2, b2, w3, b3 = params
    N, C, H = node_attr.shape
    E, Ea = edge_input.shape
    assert C == 4
    assert H % 8 == 0, "H must be a multiple of 8 (sublane) for the W1 split"

    w1s = w1[0:H]          # (H, 3H)  source-node block of layer 1
    w1t = w1[H:2 * H]      # (H, 3H)  target-node block of layer 1
    w1e = w1[2 * H:]       # (Ea, 3H) edge block of layer 1

    # Fold Conv1d(4,1,1) into the node-side layer-1 projection (prep runs in XLA):
    #   Wbig_x[c*H + h, j] = cw[c] * w1x[h, j];   bias_x[j] = cb * sum_h w1x[h, j]
    wbig_src = (cw[:, None, None] * w1s[None, :, :]).reshape(4 * H, 3 * H)
    wbig_tgt = (cw[:, None, None] * w1t[None, :, :]).reshape(4 * H, 3 * H)
    wcat = jnp.concatenate([wbig_src, wbig_tgt], axis=1)              # (4H, 6H)
    bcat = jnp.concatenate([cb[0] * w1s.sum(axis=0),
                            cb[0] * w1t.sum(axis=0)])[None, :]        # (1, 6H)
    na_flat = node_attr.reshape(N, 4 * H)

    # ---- stage 1: once per call (hoisted out of the edge loop) ----
    tab = pl.pallas_call(
        _node_kernel,
        out_shape=jax.ShapeDtypeStruct((2, N, 3 * H), jnp.float32),
        grid=(1,),
        in_specs=[
            pl.BlockSpec((N, 4 * H), lambda i: (0, 0)),
            pl.BlockSpec((4 * H, 6 * H), lambda i: (0, 0)),
            pl.BlockSpec((1, 6 * H), lambda i: (0, 0)),
        ],
        out_specs=pl.BlockSpec((2, N, 3 * H), lambda i: (0, 0, 0)),
    )(na_flat, wcat, bcat)

    cd = compute_dtype
    # Rows 0..N-1: source projections; rows N..2N-1: target projections.
    # (Projected in f32, then cast to the compute dtype.)
    cat_tab = tab.reshape(2 * N, 3 * H).astype(cd)
    edge_in = edge_input.astype(cd)
    w1e_c, w2_c, w3_c = w1e.astype(cd), w2.astype(cd), w3.astype(cd)

    # Pack the two index vectors into one (E, 2) array -> single DMA per grid step.
    rc = jnp.stack([row.astype(jnp.int32), col.astype(jnp.int32)], axis=1)

    # Tile-size selection: multiple of 128 (MXU M fill), clamped by the VMEM budget.
    in_item = jnp.dtype(cd).itemsize
    out_item = jnp.dtype(out_dtype).itemsize
    tile_e = _round_up(max(128, min(int(tile_e), _round_up(E, 128))), 128)
    while tile_e > 128 and _edge_vmem_estimate(
            tile_e, N, H, Ea, in_item, out_item) > _VMEM_BUDGET_BYTES:
        tile_e -= 128
    grid = (pl.cdiv(E, tile_e),)        # ragged tail: padded rows discarded on write

    def run(single_buffer_consts):
        def const_spec(shape):
            kwargs = {}
            if single_buffer_consts and hasattr(pl, "Buffered"):
                # Constant index_map -> fetched once; one VMEM buffer is enough.
                kwargs["pipeline_mode"] = pl.Buffered(1)
            return pl.BlockSpec(shape, lambda i: tuple(0 for _ in shape), **kwargs)

        return pl.pallas_call(
            _edge_kernel,
            out_shape=jax.ShapeDtypeStruct((E, H), out_dtype),
            grid=grid,
            in_specs=[
                pl.BlockSpec((tile_e, 2), lambda i: (i, 0)),     # packed (row, col)
                # TODO(synk): raise this streaming spec to pl.Buffered(3) only if an
                # xprof trace shows exposed DMA at large tile_e.
                pl.BlockSpec((tile_e, Ea), lambda i: (i, 0)),    # edge feature tile
                const_spec((2 * N, 3 * H)),                      # fused node table
                const_spec((Ea, 3 * H)), const_spec((1, 3 * H)),  # layer 1 (edge) + bias
                const_spec((3 * H, 2 * H)), const_spec((1, 2 * H)),  # layer 2
                const_spec((2 * H, H)), const_spec((1, H)),      # layer 3
            ],
            out_specs=pl.BlockSpec((tile_e, H), lambda i: (i, 0)),
            compiler_params=pltpu.CompilerParams(
                # Edge tiles are fully independent -> shard across v7x's 2 TCs.
                dimension_semantics=("parallel",),
                vmem_limit_bytes=_VMEM_LIMIT_BYTES,
            ),
        )(rc, edge_in, cat_tab, w1e_c, b1, w2_c, b2, w3_c, b3)

    try:
        return run(True)
    except Exception:
        # TODO(synk): pl.Buffered(1) not lowerable on this JAX build; fall back to
        # default double-buffering (same semantics, 2x VMEM on constant operands).
        return run(False)


def init_params(key, hidden_dim, edge_attr_dim):
    """Deterministic synthetic init mirroring EdgeConv._reset_parameters()."""
    k = jax.random.split(key, 5)
    d_in = 2 * hidden_dim + edge_attr_dim
    # Conv1d(4,1,1): weight ~ N(0, sqrt(2/fan_out)) with fan_out=1
    cw = jax.random.normal(k[0], (4,), jnp.float32) * math.sqrt(2.0)
    cb = jax.random.uniform(k[1], (1,), jnp.float32, -0.5, 0.5)   # default conv bias range
    # Linear layers: weight ~ N(0, 0.01) (stored as (in, out)), bias = 0
    w1 = jax.random.normal(k[2], (d_in, 3 * hidden_dim), jnp.float32) * 0.01
    w2 = jax.random.normal(k[3], (3 * hidden_dim, 2 * hidden_dim), jnp.float32) * 0.01
    w3 = jax.random.normal(k[4], (2 * hidden_dim, hidden_dim), jnp.float32) * 0.01
    b1 = jnp.zeros((1, 3 * hidden_dim), jnp.float32)
    b2 = jnp.zeros((1, 2 * hidden_dim), jnp.float32)
    b3 = jnp.zeros((1, hidden_dim), jnp.float32)
    return cw, cb, w1, b1, w2, b2, w3, b3


def reference_forward(node_attr, edge_input, row, col, params):
    """Pure-JAX reference (true f32: HIGHEST matmul precision)."""
    cw, cb, w1, b1, w2, b2, w3, b3 = params
    hp = jax.lax.Precision.HIGHEST
    node_emb = (node_attr * cw[None, :, None]).sum(axis=1) + cb[0]
    src, tgt = node_emb[row], node_emb[col]
    x = jnp.concatenate([src, tgt, edge_input], axis=1)
    h = jax.nn.relu(jnp.dot(x, w1, precision=hp) + b1)
    h = jax.nn.relu(jnp.dot(h, w2, precision=hp) + b2)
    h = jax.nn.relu(jnp.dot(h, w3, precision=hp) + b3)
    return h


if __name__ == "__main__":
    hidden_dim = 128        # module defaults (lane-dense output / matmul dims)
    edge_attr_dim = 128
    N, E = 16, 200          # E not a multiple of tile_e -> exercises the ragged tail

    key = jax.random.PRNGKey(0)
    kx, ke, kr, kc, kp = jax.random.split(key, 5)

    node_attr = jax.random.normal(kx, (N, 4, hidden_dim), jnp.float32)
    edge_input = jax.random.normal(ke, (E, edge_attr_dim), jnp.float32)
    row = jax.random.randint(kr, (E,), 0, N, jnp.int32)
    col = jax.random.randint(kc, (E,), 0, N, jnp.int32)
    params = init_params(kp, hidden_dim, edge_attr_dim)

    ref = reference_forward(node_attr, edge_input, row, col, params)

    # f32-operand path: tight agreement with the f32 reference.
    out_f32 = edgeconv_forward(node_attr, edge_input, row, col, params,
                               compute_dtype=jnp.float32)
    out_f32 = jax.block_until_ready(out_f32)
    assert out_f32.shape == (E, hidden_dim)
    err_f32 = float(jnp.max(jnp.abs(out_f32 - ref)))
    assert err_f32 < 1e-3, f"f32 kernel mismatch vs reference (max |err| = {err_f32:.3e})"

    # Default bf16-operand path (f32 accumulation): v6e/v7x MXU peak.
    out_bf16 = edgeconv_forward(node_attr, edge_input, row, col, params)
    out_bf16 = jax.block_until_ready(out_bf16)
    assert out_bf16.shape == (E, hidden_dim)
    err_bf16 = float(jnp.max(jnp.abs(out_bf16 - ref)))
    assert err_bf16 < 5e-3, f"bf16 kernel too far from reference (max |err| = {err_bf16:.3e})"

    print("KERNEL_OK")
</pallas_src>

<mosaic_0001>
module attributes {stable_mosaic.version = 11 : i64} {
  func.func @_node_kernel(%arg0: i32, %arg1: memref<16x512xf32, #tpu.memory_space<vmem>>, %arg2: memref<512x768xf32, #tpu.memory_space<vmem>>, %arg3: memref<1x768xf32, #tpu.memory_space<vmem>>, %arg4: memref<2x16x384xf32, #tpu.memory_space<vmem>>) attributes {dimension_semantics = [#tpu.dimension_semantics<arbitrary>], iteration_bounds = array<i64: 1>, scalar_prefetch = 0 : i64, scratch_operands = 0 : i64, tpu.core_type = #tpu.core_type<tc>, window_params = [{pipeline_mode = #tpu.pipeline_mode<synchronous>, transform_indices = @transform_0, window_bounds = array<i64: 16, 512>}, {pipeline_mode = #tpu.pipeline_mode<synchronous>, transform_indices = @transform_1, window_bounds = array<i64: 512, 768>}, {pipeline_mode = #tpu.pipeline_mode<synchronous>, transform_indices = @transform_2, window_bounds = array<i64: 1, 768>}, {pipeline_mode = #tpu.pipeline_mode<synchronous>, transform_indices = @transform_3, window_bounds = array<i64: 2, 16, 384>}]} {
    %c0 = arith.constant 0 : index
    %c0_0 = arith.constant 0 : index
    %0 = vector.load %arg1[%c0, %c0_0] : memref<16x512xf32, #tpu.memory_space<vmem>>, vector<16x512xf32>
    %c0_1 = arith.constant 0 : index
    %c0_2 = arith.constant 0 : index
    %1 = vector.load %arg2[%c0_1, %c0_2] : memref<512x768xf32, #tpu.memory_space<vmem>>, vector<512x768xf32>
    %cst = arith.constant dense<0.000000e+00> : vector<16x768xf32>
    %2 = tpu.matmul %0, %1, %cst {dimension_numbers = #tpu.dot_dimension_numbers<[1], [0], [0], [1], [0, 0, 1, 1], [], []>} : vector<16x512xf32>, vector<512x768xf32>, vector<16x768xf32> -> vector<16x768xf32>
    %c0_3 = arith.constant 0 : index
    %c0_4 = arith.constant 0 : index
    %3 = vector.load %arg3[%c0_3, %c0_4] : memref<1x768xf32, #tpu.memory_space<vmem>>, vector<1x768xf32>
    %4 = vector.broadcast %3 : vector<1x768xf32> to vector<16x768xf32>
    %5 = arith.addf %2, %4 : vector<16x768xf32>
    %6 = vector.extract_strided_slice %5 {offsets = [0, 0], sizes = [16, 384], strides = [1, 1]} : vector<16x768xf32> to vector<16x384xf32>
    %c0_5 = arith.constant 0 : index
    %c0_6 = arith.constant 0 : index
    %c0_7 = arith.constant 0 : index
    %7 = vector.load %arg4[%c0_5, %c0_6, %c0_7] : memref<2x16x384xf32, #tpu.memory_space<vmem>>, vector<1x16x384xf32>
    %8 = vector.shape_cast %7 : vector<1x16x384xf32> to vector<16x384xf32>
    %9 = vector.shape_cast %6 : vector<16x384xf32> to vector<1x16x384xf32>
    tpu.vector_store %arg4[%c0_5, %c0_6, %c0_7], %9 {strides = array<i32>} : memref<2x16x384xf32, #tpu.memory_space<vmem>>, vector<1x16x384xf32>,
    %10 = vector.extract_strided_slice %5 {offsets = [0, 384], sizes = [16, 384], strides = [1, 1]} : vector<16x768xf32> to vector<16x384xf32>
    %c1 = arith.constant 1 : index
    %c0_8 = arith.constant 0 : index
    %c0_9 = arith.constant 0 : index
    %11 = vector.load %arg4[%c1, %c0_8, %c0_9] : memref<2x16x384xf32, #tpu.memory_space<vmem>>, vector<1x16x384xf32>
    %12 = vector.shape_cast %11 : vector<1x16x384xf32> to vector<16x384xf32>
    %13 = vector.shape_cast %10 : vector<16x384xf32> to vector<1x16x384xf32>
    tpu.vector_store %arg4[%c1, %c0_8, %c0_9], %13 {strides = array<i32>} : memref<2x16x384xf32, #tpu.memory_space<vmem>>, vector<1x16x384xf32>,
    return
  }
  func.func @transform_0(%arg0: i32) -> (i32, i32) {
    %c0_i32 = arith.constant 0 : i32
    %c0_i32_0 = arith.constant 0 : i32
    %c0_i32_1 = arith.constant 0 : i32
    return %c0_i32, %c0_i32_0 : i32, i32
  }
  func.func @transform_1(%arg0: i32) -> (i32, i32) {
    %c0_i32 = arith.constant 0 : i32
    %c0_i32_0 = arith.constant 0 : i32
    %c0_i32_1 = arith.constant 0 : i32
    return %c0_i32, %c0_i32_0 : i32, i32
  }
  func.func @transform_2(%arg0: i32) -> (i32, i32) {
    %c0_i32 = arith.constant 0 : i32
    %c0_i32_0 = arith.constant 0 : i32
    %c0_i32_1 = arith.constant 0 : i32
    return %c0_i32, %c0_i32_0 : i32, i32
  }
  func.func @transform_3(%arg0: i32) -> (i32, i32, i32) {
    %c0_i32 = arith.constant 0 : i32
    %c0_i32_0 = arith.constant 0 : i32
    %c0_i32_1 = arith.constant 0 : i32
    %c0_i32_2 = arith.constant 0 : i32
    return %c0_i32, %c0_i32_0, %c0_i32_1 : i32, i32, i32
  }
}

</mosaic_0001>

<bundles_post_ra>
// kernel: tpu_custom_call.1
= control target key start
LH: loop header
LB: loop body
LE: loop exit
PB: predicated region body
PF: predicated region fallthrough
CT: control target
= control target key end

     0   :  { %8 = vsyncpa [#allocation3], 0  ;;  %s1149_s0 = inlined_call_operand.hbm [shape: f32[16,512], index: 0, kind: input, shape index: {}]   ;;  %s1150_s1 = inlined_call_operand.hbm [shape: f32[512,768], index: 1, kind: input, shape index: {}]   ;;  %s1151_s2 = inlined_call_operand.hbm [shape: f32[1,768], index: 2, kind: input, shape index: {}]   ;;  %s1152_s3 = inlined_call_operand.hbm [shape: f32[2,16,384], index: 3, kind: output, shape index: {}]  }
   0x1   :  { %9 = vsyncpa [#allocation6], 0 }
   0x2   :  { %10 = vsyncpa [#allocation4], 0  ;;  %s1071_s12 = smov [#allocation5]  }
   0x3   :  { %s28_s13 = sshll.u32 %s1071_s12, 4  ;;  %s29_s13 = int_to_ptr.vmem [resolvable:$true] %s28_s13 }
   0x4   :  { %s993_s14 = scalar_lea.vmem %s29_s13, 49152  ;;  %p998_p1 = scmp.lt.s32.totalorder %s29_s13, %s29_s13 }
   0x5   :  { %p994_p0 = scmp.ne.s32.totalorder %s29_s13, %s993_s14  ;;  %p999_p2 = scmp.lt.s32.totalorder %s993_s14, %s993_s14 }
   0x7   :  { %p1000_p3 = por %p999_p2, %p998_p1 }
   0x9   :  { %p1001_p4 = pnand %p1000_p3, %p994_p0 }
   0xb   :  { %1004 = shalt.err (!%p1001_p4)
}
   0xc   :  { %s1072_s15 = smov 768   ;;  %s1073_s16 = smov 48  }
   0xd   :  { %34 = dma.hbm_to_vmem [thread:$0]  %s1150_s1, 49152, %s29_s13, [#allocation6], %s1072_s15, %s1072_s15, %s1073_s16  }
   0xe   :  { %s1074_s19 = smov [#allocation2]  }
   0xf   :  { %s16_s20 = sshll.u32 %s1074_s19, 4  ;;  %s17_s20 = int_to_ptr.vmem [resolvable:$true] %s16_s20 }
  0x10   :  { %s1013_s21 = scalar_lea.vmem %s17_s20, 1024  ;;  %p1018_p6 = scmp.lt.s32.totalorder %s17_s20, %s17_s20 }
  0x11   :  { %p1014_p5 = scmp.ne.s32.totalorder %s17_s20, %s1013_s21  ;;  %p1019_p7 = scmp.lt.s32.totalorder %s1013_s21, %s1013_s21 }
  0x13   :  { %p1020_p8 = por %p1019_p7, %p1018_p6 }
  0x15   :  { %p1021_p9 = pnand %p1020_p8, %p1014_p5 }
  0x17   :  { %1024 = shalt.err (!%p1021_p9)
}
  0x18   :  { %s1075_s22 = smov 512   ;;  %s1076_s23 = smov 32  }
  0x19   :  { %22 = dma.hbm_to_vmem [thread:$0]  %s1149_s0, 1024, %s17_s20, [#allocation3], %s1075_s22, %s1075_s22, %s1076_s23  }
  0x1a   :  { %s1077_s26 = smov [#allocation7]  }
  0x1b   :  { %s41_s27 = sshll.u32 %s1077_s26, 4  ;;  %s42_s27 = int_to_ptr.vmem [resolvable:$true] %s41_s27 }
  0x1c   :  { %s1033_s1 = scalar_lea.vmem %s42_s27, 96  ;;  %p1038_p11 = scmp.lt.s32.totalorder %s42_s27, %s42_s27 }
  0x1d   :  { %p1034_p10 = scmp.ne.s32.totalorder %s42_s27, %s1033_s1  ;;  %p1039_p12 = scmp.lt.s32.totalorder %s1033_s1, %s1033_s1 }
  0x1f   :  { %p1040_p13 = por %p1039_p12, %p1038_p11 }
  0x21   :  { %p1041_p0 = pnand %p1040_p13, %p1034_p10 }
  0x23   :  { %1044 = shalt.err (!%p1041_p0)
}
  0x24   :  { %44 = dma.hbm_to_vmem [thread:$0]  %s1151_s2, 96, %s42_s27, [#allocation6]  }
  0x25   :  { %1065 = dma.done.wait [#allocation3], 1024  }
  0x26   :  { %1066 = vsyncadd [#allocation3], 4294966272 }
  0x27   :  { %1067 = dma.done.wait [#allocation6], 49248  }
  0x28   :  { %1068 = vsyncadd [#allocation6], 4294918048  ;;  %v153_v0 = vld [vmem:[#allocation5 + $0x2d8] sm:$0xff]  ;;  %v152_v2 = vld [vmem:[#allocation5 + $0x2d0] sm:$0xff]  ;;  %s1078_s0 = smov [#allocation8]  }
  0x29   :  { %v345_v1 = vld [vmem:[#allocation5 + $0x8d8] sm:$0xff]  ;;  %478 = vmatprep.subr.mxu0 %v153_v0  ;;  %v344_v3 = vld [vmem:[#allocation5 + $0x8d0] sm:$0xff]  ;;  %v147_v4 = vld [vmem:[#allocation5 + $0x2a8] sm:$0xff]  ;;  %s958_s2 = sshll.u32 %s1078_s0, 4  ;;  %s959_s2 = int_to_ptr.vmem [resolvable:$true] %s958_s2 }
  0x2a   :  { %555 = vmatprep.subr.mxu1 %v345_v1  ;;  %v339_v5 = vld [vmem:[#allocation5 + $0x8a8] sm:$0xff]  ;;  %479 = vmatpush1.msra.mxu0 %v152_v2  ;;  %v146_v6 = vld [vmem:[#allocation5 + $0x2a0] sm:$0xff]  ;;  %v141_v8 = vld [vmem:[#allocation5 + $0x278] sm:$0xff]  ;;  %s1045_s30 = scalar_lea.vmem %s959_s2, 1536  ;;  %p1050_p2 = scmp.lt.s32.totalorder %s959_s2, %s959_s2 }
  0x2b   :  { %556 = vmatpush1.msra.mxu1 %v344_v3  ;;  %v338_v7 = vld [vmem:[#allocation5 + $0x8a0] sm:$0xff]  ;;  %480 = vmatprep.subr.mxu0 %v147_v4  ;;  %v333_v9 = vld [vmem:[#allocation5 + $0x878] sm:$0xff]  ;;  %v140_v10 = vld [vmem:[#allocation5 + $0x270] sm:$0xff]  ;;  %p1046_p1 = scmp.ne.s32.totalorder %s959_s2, %s1045_s30  ;;  %p1051_p3 = scmp.lt.s32.totalorder %s1045_s30, %s1045_s30 }
  0x2c   :  { %557 = vmatprep.subr.mxu1 %v339_v5  ;;  %v332_v11 = vld [vmem:[#allocation5 + $0x870] sm:$0xff]  ;;  %481 = vmatpush1.msra.mxu0 %v146_v6  ;;  %v135_v12 = vld [vmem:[#allocation5 + $0x248] sm:$0xff]  ;;  %v134_v14 = vld [vmem:[#allocation5 + $0x240] sm:$0xff] }
  0x2d   :  { %558 = vmatpush1.msra.mxu1 %v338_v7  ;;  %v327_v13 = vld [vmem:[#allocation5 + $0x848] sm:$0xff]  ;;  %482 = vmatprep.subr.mxu0 %v141_v8  ;;  %v326_v15 = vld [vmem:[#allocation5 + $0x840] sm:$0xff]  ;;  %v129_v16 = vld [vmem:[#allocation5 + $0x218] sm:$0xff]  ;;  %p1052_p4 = por %p1051_p3, %p1050_p2 }
  0x2e   :  { %559 = vmatprep.subr.mxu1 %v333_v9  ;;  %483 = vmatpush1.msra.mxu0 %v140_v10  ;;  %v321_v17 = vld [vmem:[#allocation5 + $0x818] sm:$0xff]  ;;  %v128_v18 = vld [vmem:[#allocation5 + $0x210] sm:$0xff]  ;;  %v123_v20 = vld [vmem:[#allocation5 + $0x1e8] sm:$0xff] }
  0x2f   :  { %560 = vmatpush1.msra.mxu1 %v332_v11  ;;  %484 = vmatprep.subr.mxu0 %v135_v12  ;;  %v320_v19 = vld [vmem:[#allocation5 + $0x810] sm:$0xff]  ;;  %v315_v21 = vld [vmem:[#allocation5 + $0x7e8] sm:$0xff]  ;;  %v122_v22 = vld [vmem:[#allocation5 + $0x1e0] sm:$0xff]  ;;  %p1053_p5 = pnand %p1052_p4, %p1046_p1 }
  0x30   :  { %561 = vmatprep.subr.mxu1 %v327_v13  ;;  %485 = vmatpush1.msra.mxu0 %v134_v14  ;;  %v314_v23 = vld [vmem:[#allocation5 + $0x7e0] sm:$0xff]  ;;  %v117_v24 = vld [vmem:[#allocation5 + $0x1b8] sm:$0xff]  ;;  %v116_v26 = vld [vmem:[#allocation5 + $0x1b0] sm:$0xff] }
  0x31   :  { %562 = vmatpush1.msra.mxu1 %v326_v15  ;;  %486 = vmatprep.subr.mxu0 %v129_v16  ;;  %v309_v25 = vld [vmem:[#allocation5 + $0x7b8] sm:$0xff]  ;;  %v308_v27 = vld [vmem:[#allocation5 + $0x7b0] sm:$0xff]  ;;  %v111_v28 = vld [vmem:[#allocation5 + $0x188] sm:$0xff] }
  0x32   :  { %563 = vmatprep.subr.mxu1 %v321_v17  ;;  %487 = vmatpush1.msra.mxu0 %v128_v18  ;;  %v303_v29 = vld [vmem:[#allocation5 + $0x788] sm:$0xff]  ;;  %v110_v30 = vld [vmem:[#allocation5 + $0x180] sm:$0xff]  ;;  %v105_v32 = vld [vmem:[#allocation5 + $0x158] sm:$0xff] }
  0x33   :  { %564 = vmatpush1.msra.mxu1 %v320_v19  ;;  %488 = vmatprep.subr.mxu0 %v123_v20  ;;  %v302_v31 = vld [vmem:[#allocation5 + $0x780] sm:$0xff]  ;;  %v297_v33 = vld [vmem:[#allocation5 + $0x758] sm:$0xff]  ;;  %v104_v34 = vld [vmem:[#allocation5 + $0x150] sm:$0xff] }
  0x34   :  { %565 = vmatprep.subr.mxu1 %v315_v21  ;;  %489 = vmatpush1.msra.mxu0 %v122_v22  ;;  %v296_v35 = vld [vmem:[#allocation5 + $0x750] sm:$0xff]  ;;  %v99_v36 = vld [vmem:[#allocation5 + $0x128] sm:$0xff]  ;;  %v98_v38 = vld [vmem:[#allocation5 + $0x120] sm:$0xff] }
  0x35   :  { %566 = vmatpush1.msra.mxu1 %v314_v23  ;;  %490 = vmatprep.subr.mxu0 %v117_v24  ;;  %v291_v37 = vld [vmem:[#allocation5 + $0x728] sm:$0xff]  ;;  %v290_v39 = vld [vmem:[#allocation5 + $0x720] sm:$0xff]  ;;  %v93_v40 = vld [vmem:[#allocation5 + $0xf8] sm:$0xff] }
  0x36   :  { %567 = vmatprep.subr.mxu1 %v309_v25  ;;  %491 = vmatpush1.msra.mxu0 %v116_v26  ;;  %v285_v41 = vld [vmem:[#allocation5 + $0x6f8] sm:$0xff]  ;;  %v92_v42 = vld [vmem:[#allocation5 + $0xf0] sm:$0xff]  ;;  %v87_v44 = vld [vmem:[#allocation5 + $0xc8] sm:$0xff] }
  0x37   :  { %568 = vmatpush1.msra.mxu1 %v308_v27  ;;  %492 = vmatprep.subr.mxu0 %v111_v28  ;;  %v284_v43 = vld [vmem:[#allocation5 + $0x6f0] sm:$0xff]  ;;  %v279_v45 = vld [vmem:[#allocation5 + $0x6c8] sm:$0xff]  ;;  %v86_v46 = vld [vmem:[#allocation5 + $0xc0] sm:$0xff] }
  0x38   :  { %569 = vmatprep.subr.mxu1 %v303_v29  ;;  %493 = vmatpush1.msra.mxu0 %v110_v30  ;;  %v278_v47 = vld [vmem:[#allocation5 + $0x6c0] sm:$0xff]  ;;  %v81_v48 = vld [vmem:[#allocation5 + $0x98] sm:$0xff]  ;;  %v80_v50 = vld [vmem:[#allocation5 + $0x90] sm:$0xff] }
  0x39   :  { %570 = vmatpush1.msra.mxu1 %v302_v31  ;;  %494 = vmatprep.subr.mxu0 %v105_v32  ;;  %v273_v49 = vld [vmem:[#allocation5 + $0x698] sm:$0xff]  ;;  %v272_v51 = vld [vmem:[#allocation5 + $0x690] sm:$0xff]  ;;  %v75_v52 = vld [vmem:[#allocation5 + $0x68] sm:$0xff] }
  0x3a   :  { %571 = vmatprep.subr.mxu1 %v297_v33  ;;  %495 = vmatpush1.msra.mxu0 %v104_v34  ;;  %v267_v53 = vld [vmem:[#allocation5 + $0x668] sm:$0xff]  ;;  %v74_v54 = vld [vmem:[#allocation5 + $0x60] sm:$0xff]  ;;  %v69_v56 = vld [vmem:[#allocation5 + $0x38] sm:$0xff] }
  0x3b   :  { %572 = vmatpush1.msra.mxu1 %v296_v35  ;;  %496 = vmatprep.subr.mxu0 %v99_v36  ;;  %v266_v55 = vld [vmem:[#allocation5 + $0x660] sm:$0xff]  ;;  %v261_v57 = vld [vmem:[#allocation5 + $0x638] sm:$0xff]  ;;  %v68_v58 = vld [vmem:[#allocation5 + $0x30] sm:$0xff] }
  0x3c   :  { %573 = vmatprep.subr.mxu1 %v291_v37  ;;  %497 = vmatpush1.msra.mxu0 %v98_v38  ;;  %v260_v59 = vld [vmem:[#allocation5 + $0x630] sm:$0xff]  ;;  %v63_v60 = vld [vmem:[#allocation5 + $0x8] sm:$0xff]  ;;  %v62_v62 = vld [vmem:[#allocation5] sm:$0xff] }
  0x3d   :  { %574 = vmatpush1.msra.mxu1 %v290_v39  ;;  %498 = vmatprep.subr.mxu0 %v93_v40  ;;  %v255_v61 = vld [vmem:[#allocation5 + $0x608] sm:$0xff]  ;;  %v254_v63 = vld [vmem:[#allocation5 + $0x600] sm:$0xff]  ;;  %v249_v0 = vld [vmem:[#allocation5 + $0x5d8] sm:$0xff] }
  0x3e   :  { %575 = vmatprep.subr.mxu1 %v285_v41  ;;  %499 = vmatpush1.msra.mxu0 %v92_v42  ;;  %v441_v1 = vld [vmem:[#allocation5 + $0xbd8] sm:$0xff]  ;;  %v248_v2 = vld [vmem:[#allocation5 + $0x5d0] sm:$0xff]  ;;  %v243_v4 = vld [vmem:[#allocation5 + $0x5a8] sm:$0xff] }
  0x3f   :  { %576 = vmatpush1.msra.mxu1 %v284_v43  ;;  %500 = vmatprep.subr.mxu0 %v87_v44  ;;  %v440_v3 = vld [vmem:[#allocation5 + $0xbd0] sm:$0xff]  ;;  %v435_v5 = vld [vmem:[#allocation5 + $0xba8] sm:$0xff]  ;;  %v242_v6 = vld [vmem:[#allocation5 + $0x5a0] sm:$0xff] }
  0x40   :  { %577 = vmatprep.subr.mxu1 %v279_v45  ;;  %501 = vmatpush1.msra.mxu0 %v86_v46  ;;  %v434_v7 = vld [vmem:[#allocation5 + $0xba0] sm:$0xff]  ;;  %v237_v8 = vld [vmem:[#allocation5 + $0x578] sm:$0xff]  ;;  %v236_v10 = vld [vmem:[#allocation5 + $0x570] sm:$0xff] }
  0x41   :  { %578 = vmatpush1.msra.mxu1 %v278_v47  ;;  %502 = vmatprep.subr.mxu0 %v81_v48  ;;  %v429_v9 = vld [vmem:[#allocation5 + $0xb78] sm:$0xff]  ;;  %v428_v11 = vld [vmem:[#allocation5 + $0xb70] sm:$0xff]  ;;  %v231_v12 = vld [vmem:[#allocation5 + $0x548] sm:$0xff] }
  0x42   :  { %579 = vmatprep.subr.mxu1 %v273_v49  ;;  %503 = vmatpush1.msra.mxu0 %v80_v50  ;;  %v423_v13 = vld [vmem:[#allocation5 + $0xb48] sm:$0xff]  ;;  %v230_v14 = vld [vmem:[#allocation5 + $0x540] sm:$0xff]  ;;  %v225_v16 = vld [vmem:[#allocation5 + $0x518] sm:$0xff] }
  0x43   :  { %580 = vmatpush1.msra.mxu1 %v272_v51  ;;  %504 = vmatprep.subr.mxu0 %v75_v52  ;;  %v422_v15 = vld [vmem:[#allocation5 + $0xb40] sm:$0xff]  ;;  %v417_v17 = vld [vmem:[#allocation5 + $0xb18] sm:$0xff]  ;;  %v224_v18 = vld [vmem:[#allocation5 + $0x510] sm:$0xff] }
  0x44   :  { %581 = vmatprep.subr.mxu1 %v267_v53  ;;  %505 = vmatpush1.msra.mxu0 %v74_v54  ;;  %v416_v19 = vld [vmem:[#allocation5 + $0xb10] sm:$0xff]  ;;  %v219_v20 = vld [vmem:[#allocation5 + $0x4e8] sm:$0xff]  ;;  %v218_v22 = vld [vmem:[#allocation5 + $0x4e0] sm:$0xff] }
  0x45   :  { %582 = vmatpush1.msra.mxu1 %v266_v55  ;;  %506 = vmatprep.subr.mxu0 %v69_v56  ;;  %v411_v21 = vld [vmem:[#allocation5 + $0xae8] sm:$0xff]  ;;  %v410_v23 = vld [vmem:[#allocation5 + $0xae0] sm:$0xff]  ;;  %v213_v24 = vld [vmem:[#allocation5 + $0x4b8] sm:$0xff] }
  0x46   :  { %583 = vmatprep.subr.mxu1 %v261_v57  ;;  %507 = vmatpush1.msra.mxu0 %v68_v58  ;;  %v405_v25 = vld [vmem:[#allocation5 + $0xab8] sm:$0xff]  ;;  %v212_v26 = vld [vmem:[#allocation5 + $0x4b0] sm:$0xff]  ;;  %v207_v28 = vld [vmem:[#allocation5 + $0x488] sm:$0xff] }
  0x47   :  { %584 = vmatpush1.msra.mxu1 %v260_v59  ;;  %508 = vmatprep.subr.mxu0 %v63_v60  ;;  %v404_v27 = vld [vmem:[#allocation5 + $0xab0] sm:$0xff]  ;;  %v399_v29 = vld [vmem:[#allocation5 + $0xa88] sm:$0xff]  ;;  %v206_v30 = vld [vmem:[#allocation5 + $0x480] sm:$0xff] }
  0x48   :  { %585 = vmatprep.subr.mxu1 %v255_v61  ;;  %509 = vmatpush1.msra.mxu0 %v62_v62  ;;  %v398_v31 = vld [vmem:[#allocation5 + $0xa80] sm:$0xff]  ;;  %v201_v32 = vld [vmem:[#allocation5 + $0x458] sm:$0xff]  ;;  %v200_v34 = vld [vmem:[#allocation5 + $0x450] sm:$0xff] }
  0x49   :  { %586 = vmatpush1.msra.mxu1 %v254_v63  ;;  %510 = vmatprep.subr.mxu0 %v249_v0  ;;  %v393_v33 = vld [vmem:[#allocation5 + $0xa58] sm:$0xff]  ;;  %v392_v35 = vld [vmem:[#allocation5 + $0xa50] sm:$0xff]  ;;  %v195_v36 = vld [vmem:[#allocation5 + $0x428] sm:$0xff] }
  0x4a   :  { %587 = vmatprep.subr.mxu1 %v441_v1  ;;  %511 = vmatpush2.msra.mxu0 %v248_v2  ;;  %v387_v37 = vld [vmem:[#allocation5 + $0xa28] sm:$0xff]  ;;  %v194_v38 = vld [vmem:[#allocation5 + $0x420] sm:$0xff]  ;;  %v189_v40 = vld [vmem:[#allocation5 + $0x3f8] sm:$0xff] }
  0x4b   :  { %588 = vmatpush2.msra.mxu1 %v440_v3  ;;  %512 = vmatprep.subr.mxu0 %v243_v4  ;;  %v386_v39 = vld [vmem:[#allocation5 + $0xa20] sm:$0xff]  ;;  %v381_v41 = vld [vmem:[#allocation5 + $0x9f8] sm:$0xff]  ;;  %v188_v42 = vld [vmem:[#allocation5 + $0x3f0] sm:$0xff] }
  0x4c   :  { %589 = vmatprep.subr.mxu1 %v435_v5  ;;  %513 = vmatpush2.msra.mxu0 %v242_v6  ;;  %v380_v43 = vld [vmem:[#allocation5 + $0x9f0] sm:$0xff]  ;;  %v183_v44 = vld [vmem:[#allocation5 + $0x3c8] sm:$0xff]  ;;  %v182_v46 = vld [vmem:[#allocation5 + $0x3c0] sm:$0xff] }
  0x4d   :  { %590 = vmatpush2.msra.mxu1 %v434_v7  ;;  %514 = vmatprep.subr.mxu0 %v237_v8  ;;  %v375_v45 = vld [vmem:[#allocation5 + $0x9c8] sm:$0xff]  ;;  %v374_v47 = vld [vmem:[#allocation5 + $0x9c0] sm:$0xff]  ;;  %v177_v48 = vld [vmem:[#allocation5 + $0x398] sm:$0xff] }
  0x4e   :  { %591 = vmatprep.subr.mxu1 %v429_v9  ;;  %515 = vmatpush2.msra.mxu0 %v236_v10  ;;  %v369_v49 = vld [vmem:[#allocation5 + $0x998] sm:$0xff]  ;;  %v176_v50 = vld [vmem:[#allocation5 + $0x390] sm:$0xff]  ;;  %v171_v52 = vld [vmem:[#allocation5 + $0x368] sm:$0xff] }
  0x4f   :  { %592 = vmatpush2.msra.mxu1 %v428_v11  ;;  %516 = vmatprep.subr.mxu0 %v231_v12  ;;  %v368_v51 = vld [vmem:[#allocation5 + $0x990] sm:$0xff]  ;;  %v363_v53 = vld [vmem:[#allocation5 + $0x968] sm:$0xff]  ;;  %v170_v54 = vld [vmem:[#allocation5 + $0x360] sm:$0xff] }
  0x50   :  { %593 = vmatprep.subr.mxu1 %v423_v13  ;;  %517 = vmatpush2.msra.mxu0 %v230_v14  ;;  %v362_v55 = vld [vmem:[#allocation5 + $0x960] sm:$0xff]  ;;  %v165_v56 = vld [vmem:[#allocation5 + $0x338] sm:$0xff]  ;;  %v164_v58 = vld [vmem:[#allocation5 + $0x330] sm:$0xff] }
  0x51   :  { %594 = vmatpush2.msra.mxu1 %v422_v15  ;;  %518 = vmatprep.subr.mxu0 %v225_v16  ;;  %v357_v57 = vld [vmem:[#allocation5 + $0x938] sm:$0xff]  ;;  %v356_v59 = vld [vmem:[#allocation5 + $0x930] sm:$0xff]  ;;  %v159_v60 = vld [vmem:[#allocation5 + $0x308] sm:$0xff] }
  0x52   :  { %595 = vmatprep.subr.mxu1 %v417_v17  ;;  %519 = vmatpush2.msra.mxu0 %v224_v18  ;;  %v351_v61 = vld [vmem:[#allocation5 + $0x908] sm:$0xff]  ;;  %v158_v62 = vld [vmem:[#allocation5 + $0x300] sm:$0xff]  ;;  %v1114_v2 = vld [vmem:[#allocation2 + $0x18] sm:$0xff] }
  0x53   :  { %596 = vmatpush2.msra.mxu1 %v416_v19  ;;  %520 = vmatprep.subr.mxu0 %v219_v20  ;;  %v1110_v63 = vld [vmem:[#allocation2 + $0x8] sm:$0xff]  ;;  %v350_v0 = vld [vmem:[#allocation5 + $0x900] sm:$0xff]  ;;  %v1117_v5 = vld [vmem:[#allocation2 + $0x10] sm:$0xff] }
  0x54   :  { %597 = vmatprep.subr.mxu1 %v411_v21  ;;  %521 = vmatpush2.msra.mxu0 %v218_v22  ;;  %v1112_v1 = vld [vmem:[#allocation2] sm:$0xff]  ;;  %v155_v3 = vld [vmem:[#allocation5 + $0x2e8] sm:$0xff]  ;;  %v149_v8 = vld [vmem:[#allocation5 + $0x2b8] sm:$0xff] }
  0x55   :  { %598 = vmatpush2.msra.mxu1 %v410_v23  ;;  %522 = vmatprep.subr.mxu0 %v213_v24  ;;  %v347_v4 = vld [vmem:[#allocation5 + $0x8e8] sm:$0xff]  ;;  %v154_v6 = vld [vmem:[#allocation5 + $0x2e0] sm:$0xff]  ;;  %v341_v9 = vld [vmem:[#allocation5 + $0x8b8] sm:$0xff] }
  0x56   :  { %599 = vmatprep.subr.mxu1 %v405_v25  ;;  %523 = vmatpush2.msra.mxu0 %v212_v26  ;;  %v346_v7 = vld [vmem:[#allocation5 + $0x8e0] sm:$0xff]  ;;  %v148_v10 = vld [vmem:[#allocation5 + $0x2b0] sm:$0xff]  ;;  %v143_v12 = vld [vmem:[#allocation5 + $0x288] sm:$0xff] }
  0x57   :  { %600 = vmatpush2.msra.mxu1 %v404_v27  ;;  %524 = vmatprep.subr.mxu0 %v207_v28  ;;  %v340_v11 = vld [vmem:[#allocation5 + $0x8b0] sm:$0xff]  ;;  %v335_v13 = vld [vmem:[#allocation5 + $0x888] sm:$0xff]  ;;  %v142_v14 = vld [vmem:[#allocation5 + $0x280] sm:$0xff] }
  0x58   :  { %601 = vmatprep.subr.mxu1 %v399_v29  ;;  %525 = vmatpush2.msra.mxu0 %v206_v30  ;;  %v334_v15 = vld [vmem:[#allocation5 + $0x880] sm:$0xff]  ;;  %v137_v16 = vld [vmem:[#allocation5 + $0x258] sm:$0xff]  ;;  %v136_v18 = vld [vmem:[#allocation5 + $0x250] sm:$0xff] }
  0x59   :  { %602 = vmatpush2.msra.mxu1 %v398_v31  ;;  %526 = vmatprep.subr.mxu0 %v201_v32  ;;  %v329_v17 = vld [vmem:[#allocation5 + $0x858] sm:$0xff]  ;;  %v328_v19 = vld [vmem:[#allocation5 + $0x850] sm:$0xff]  ;;  %v131_v20 = vld [vmem:[#allocation5 + $0x228] sm:$0xff] }
  0x5a   :  { %603 = vmatprep.subr.mxu1 %v393_v33  ;;  %527 = vmatpush2.msra.mxu0 %v200_v34  ;;  %v323_v21 = vld [vmem:[#allocation5 + $0x828] sm:$0xff]  ;;  %v130_v22 = vld [vmem:[#allocation5 + $0x220] sm:$0xff]  ;;  %v125_v24 = vld [vmem:[#allocation5 + $0x1f8] sm:$0xff] }
  0x5b   :  { %604 = vmatpush2.msra.mxu1 %v392_v35  ;;  %528 = vmatprep.subr.mxu0 %v195_v36  ;;  %v322_v23 = vld [vmem:[#allocation5 + $0x820] sm:$0xff]  ;;  %v317_v25 = vld [vmem:[#allocation5 + $0x7f8] sm:$0xff]  ;;  %v124_v26 = vld [vmem:[#allocation5 + $0x1f0] sm:$0xff] }
  0x5c   :  { %605 = vmatprep.subr.mxu1 %v387_v37  ;;  %529 = vmatpush2.msra.mxu0 %v194_v38  ;;  %v316_v27 = vld [vmem:[#allocation5 + $0x7f0] sm:$0xff]  ;;  %v119_v28 = vld [vmem:[#allocation5 + $0x1c8] sm:$0xff]  ;;  %v118_v30 = vld [vmem:[#allocation5 + $0x1c0] sm:$0xff] }
  0x5d   :  { %606 = vmatpush2.msra.mxu1 %v386_v39  ;;  %530 = vmatprep.subr.mxu0 %v189_v40  ;;  %v311_v29 = vld [vmem:[#allocation5 + $0x7c8] sm:$0xff]  ;;  %v310_v31 = vld [vmem:[#allocation5 + $0x7c0] sm:$0xff]  ;;  %v113_v32 = vld [vmem:[#allocation5 + $0x198] sm:$0xff] }
  0x5e   :  { %607 = vmatprep.subr.mxu1 %v381_v41  ;;  %531 = vmatpush2.msra.mxu0 %v188_v42  ;;  %v305_v33 = vld [vmem:[#allocation5 + $0x798] sm:$0xff]  ;;  %v112_v34 = vld [vmem:[#allocation5 + $0x190] sm:$0xff]  ;;  %v107_v36 = vld [vmem:[#allocation5 + $0x168] sm:$0xff] }
  0x5f   :  { %608 = vmatpush2.msra.mxu1 %v380_v43  ;;  %532 = vmatprep.subr.mxu0 %v183_v44  ;;  %v304_v35 = vld [vmem:[#allocation5 + $0x790] sm:$0xff]  ;;  %v299_v37 = vld [vmem:[#allocation5 + $0x768] sm:$0xff]  ;;  %v106_v38 = vld [vmem:[#allocation5 + $0x160] sm:$0xff] }
  0x60   :  { %609 = vmatprep.subr.mxu1 %v375_v45  ;;  %533 = vmatpush2.msra.mxu0 %v182_v46  ;;  %v298_v39 = vld [vmem:[#allocation5 + $0x760] sm:$0xff]  ;;  %v101_v40 = vld [vmem:[#allocation5 + $0x138] sm:$0xff]  ;;  %v100_v42 = vld [vmem:[#allocation5 + $0x130] sm:$0xff] }
  0x61   :  { %610 = vmatpush2.msra.mxu1 %v374_v47  ;;  %534 = vmatprep.subr.mxu0 %v177_v48  ;;  %v293_v41 = vld [vmem:[#allocation5 + $0x738] sm:$0xff]  ;;  %v292_v43 = vld [vmem:[#allocation5 + $0x730] sm:$0xff]  ;;  %v95_v44 = vld [vmem:[#allocation5 + $0x108] sm:$0xff] }
  0x62   :  { %611 = vmatprep.subr.mxu1 %v369_v49  ;;  %535 = vmatpush2.msra.mxu0 %v176_v50  ;;  %v287_v45 = vld [vmem:[#allocation5 + $0x708] sm:$0xff]  ;;  %v94_v46 = vld [vmem:[#allocation5 + $0x100] sm:$0xff]  ;;  %v89_v48 = vld [vmem:[#allocation5 + $0xd8] sm:$0xff] }
  0x63   :  { %612 = vmatpush2.msra.mxu1 %v368_v51  ;;  %536 = vmatprep.subr.mxu0 %v171_v52  ;;  %v286_v47 = vld [vmem:[#allocation5 + $0x700] sm:$0xff]  ;;  %v281_v49 = vld [vmem:[#allocation5 + $0x6d8] sm:$0xff]  ;;  %v88_v50 = vld [vmem:[#allocation5 + $0xd0] sm:$0xff] }
  0x64   :  { %613 = vmatprep.subr.mxu1 %v363_v53  ;;  %537 = vmatpush2.msra.mxu0 %v170_v54  ;;  %v280_v51 = vld [vmem:[#allocation5 + $0x6d0] sm:$0xff]  ;;  %v83_v52 = vld [vmem:[#allocation5 + $0xa8] sm:$0xff]  ;;  %v82_v54 = vld [vmem:[#allocation5 + $0xa0] sm:$0xff] }
  0x65   :  { %614 = vmatpush2.msra.mxu1 %v362_v55  ;;  %538 = vmatprep.subr.mxu0 %v165_v56  ;;  %v275_v53 = vld [vmem:[#allocation5 + $0x6a8] sm:$0xff]  ;;  %v274_v55 = vld [vmem:[#allocation5 + $0x6a0] sm:$0xff]  ;;  %v77_v56 = vld [vmem:[#allocation5 + $0x78] sm:$0xff] }
  0x66   :  { %615 = vmatprep.subr.mxu1 %v357_v57  ;;  %539 = vmatpush2.msra.mxu0 %v164_v58  ;;  %v269_v57 = vld [vmem:[#allocation5 + $0x678] sm:$0xff]  ;;  %v76_v58 = vld [vmem:[#allocation5 + $0x70] sm:$0xff] }
  0x67   :  { %616 = vmatpush2.msra.mxu1 %v356_v59  ;;  %540 = vmatprep.subr.mxu0 %v159_v60  ;;  %v268_v59 = vld [vmem:[#allocation5 + $0x670] sm:$0xff]  ;;  %v71_v60 = vld [vmem:[#allocation5 + $0x48] sm:$0xff] }
  0x68   :  { %617 = vmatprep.subr.mxu1 %v351_v61  ;;  %541 = vmatpush2.msra.mxu0 %v158_v62  ;;  %v263_v61 = vld [vmem:[#allocation5 + $0x648] sm:$0xff]  ;;  %v70_v62 = vld [vmem:[#allocation5 + $0x40] sm:$0xff] }
  0x69   :  { %542 = vmatprep.mubr.f32.mxu0 %v1110_v63  ;;  %618 = vmatpush2.msra.mxu1 %v350_v0  ;;  %v262_v0 = vld [vmem:[#allocation5 + $0x640] sm:$0xff] }
  0x6a   :  { %543 = vmatmul.mubr.f32.vlgmr.msra.gmra.mxu0 %v1112_v1  ;;  %619 = vmatprep.mubr.f32.mxu1 %v1114_v2 }
  0x6b   :  { %632 = vmatprep.subr.mxu0 %v155_v3  ;;  %709 = vmatprep.subr.mxu1 %v347_v4  ;;  %v65_v3 = vld [vmem:[#allocation5 + $0x18] sm:$0xff] }
  0x6c   :  { %620 = vmatmul.mubr.f32.vlgmr.msra.gmra.mxu1 %v1117_v5  ;;  %633 = vmatpush1.msra.mxu0 %v154_v6  ;;  %v257_v4 = vld [vmem:[#allocation5 + $0x618] sm:$0xff]  ;;  %v64_v6 = vld [vmem:[#allocation5 + $0x10] sm:$0xff] }
  0x6d   :  { %710 = vmatpush1.msra.mxu1 %v346_v7  ;;  %634 = vmatprep.subr.mxu0 %v149_v8  ;;  %v256_v7 = vld [vmem:[#allocation5 + $0x610] sm:$0xff]  ;;  %v251_v8 = vld [vmem:[#allocation5 + $0x5e8] sm:$0xff] }
  0x6e   :  { %711 = vmatprep.subr.mxu1 %v341_v9  ;;  %635 = vmatpush1.msra.mxu0 %v148_v10  ;;  %v443_v9 = vld [vmem:[#allocation5 + $0xbe8] sm:$0xff]  ;;  %v250_v10 = vld [vmem:[#allocation5 + $0x5e0] sm:$0xff] }
  0x6f   :  { %712 = vmatpush1.msra.mxu1 %v340_v11  ;;  %636 = vmatprep.subr.mxu0 %v143_v12  ;;  %v442_v11 = vld [vmem:[#allocation5 + $0xbe0] sm:$0xff]  ;;  %v245_v12 = vld [vmem:[#allocation5 + $0x5b8] sm:$0xff] }
  0x70   :  { %713 = vmatprep.subr.mxu1 %v335_v13  ;;  %637 = vmatpush1.msra.mxu0 %v142_v14  ;;  %v437_v13 = vld [vmem:[#allocation5 + $0xbb8] sm:$0xff]  ;;  %v244_v14 = vld [vmem:[#allocation5 + $0x5b0] sm:$0xff] }
  0x71   :  { %714 = vmatpush1.msra.mxu1 %v334_v15  ;;  %638 = vmatprep.subr.mxu0 %v137_v16  ;;  %v436_v15 = vld [vmem:[#allocation5 + $0xbb0] sm:$0xff]  ;;  %v239_v16 = vld [vmem:[#allocation5 + $0x588] sm:$0xff] }
  0x72   :  { %715 = vmatprep.subr.mxu1 %v329_v17  ;;  %639 = vmatpush1.msra.mxu0 %v136_v18  ;;  %v431_v17 = vld [vmem:[#allocation5 + $0xb88] sm:$0xff]  ;;  %v238_v18 = vld [vmem:[#allocation5 + $0x580] sm:$0xff] }
  0x73   :  { %716 = vmatpush1.msra.mxu1 %v328_v19  ;;  %640 = vmatprep.subr.mxu0 %v131_v20  ;;  %v430_v19 = vld [vmem:[#allocation5 + $0xb80] sm:$0xff]  ;;  %v233_v20 = vld [vmem:[#allocation5 + $0x558] sm:$0xff] }
  0x74   :  { %717 = vmatprep.subr.mxu1 %v323_v21  ;;  %641 = vmatpush1.msra.mxu0 %v130_v22  ;;  %v425_v21 = vld [vmem:[#allocation5 + $0xb58] sm:$0xff]  ;;  %v232_v22 = vld [vmem:[#allocation5 + $0x550] sm:$0xff] }
  0x75   :  { %718 = vmatpush1.msra.mxu1 %v322_v23  ;;  %642 = vmatprep.subr.mxu0 %v125_v24  ;;  %v424_v23 = vld [vmem:[#allocation5 + $0xb50] sm:$0xff]  ;;  %v227_v24 = vld [vmem:[#allocation5 + $0x528] sm:$0xff] }
  0x76   :  { %719 = vmatprep.subr.mxu1 %v317_v25  ;;  %643 = vmatpush1.msra.mxu0 %v124_v26  ;;  %v419_v25 = vld [vmem:[#allocation5 + $0xb28] sm:$0xff]  ;;  %v226_v26 = vld [vmem:[#allocation5 + $0x520] sm:$0xff] }
  0x77   :  { %720 = vmatpush1.msra.mxu1 %v316_v27  ;;  %644 = vmatprep.subr.mxu0 %v119_v28  ;;  %v418_v27 = vld [vmem:[#allocation5 + $0xb20] sm:$0xff]  ;;  %v221_v28 = vld [vmem:[#allocation5 + $0x4f8] sm:$0xff] }
  0x78   :  { %721 = vmatprep.subr.mxu1 %v311_v29  ;;  %645 = vmatpush1.msra.mxu0 %v118_v30  ;;  %v413_v29 = vld [vmem:[#allocation5 + $0xaf8] sm:$0xff]  ;;  %v220_v30 = vld [vmem:[#allocation5 + $0x4f0] sm:$0xff] }
  0x79   :  { %722 = vmatpush1.msra.mxu1 %v310_v31  ;;  %646 = vmatprep.subr.mxu0 %v113_v32  ;;  %v412_v31 = vld [vmem:[#allocation5 + $0xaf0] sm:$0xff]  ;;  %v215_v32 = vld [vmem:[#allocation5 + $0x4c8] sm:$0xff] }
  0x7a   :  { %723 = vmatprep.subr.mxu1 %v305_v33  ;;  %647 = vmatpush1.msra.mxu0 %v112_v34  ;;  %v407_v33 = vld [vmem:[#allocation5 + $0xac8] sm:$0xff]  ;;  %v214_v34 = vld [vmem:[#allocation5 + $0x4c0] sm:$0xff] }
  0x7b   :  { %724 = vmatpush1.msra.mxu1 %v304_v35  ;;  %648 = vmatprep.subr.mxu0 %v107_v36  ;;  %v406_v35 = vld [vmem:[#allocation5 + $0xac0] sm:$0xff]  ;;  %v209_v36 = vld [vmem:[#allocation5 + $0x498] sm:$0xff] }
  0x7c   :  { %725 = vmatprep.subr.mxu1 %v299_v37  ;;  %649 = vmatpush1.msra.mxu0 %v106_v38  ;;  %v401_v37 = vld [vmem:[#allocation5 + $0xa98] sm:$0xff]  ;;  %v208_v38 = vld [vmem:[#allocation5 + $0x490] sm:$0xff] }
  0x7d   :  { %726 = vmatpush1.msra.mxu1 %v298_v39  ;;  %650 = vmatprep.subr.mxu0 %v101_v40  ;;  %v400_v39 = vld [vmem:[#allocation5 + $0xa90] sm:$0xff]  ;;  %v203_v40 = vld [vmem:[#allocation5 + $0x468] sm:$0xff] }
  0x7e   :  { %727 = vmatprep.subr.mxu1 %v293_v41  ;;  %651 = vmatpush1.msra.mxu0 %v100_v42  ;;  %v395_v41 = vld [vmem:[#allocation5 + $0xa68] sm:$0xff]  ;;  %v202_v42 = vld [vmem:[#allocation5 + $0x460] sm:$0xff] }
  0x7f   :  { %728 = vmatpush1.msra.mxu1 %v292_v43  ;;  %652 = vmatprep.subr.mxu0 %v95_v44  ;;  %v394_v43 = vld [vmem:[#allocation5 + $0xa60] sm:$0xff]  ;;  %v197_v44 = vld [vmem:[#allocation5 + $0x438] sm:$0xff] }
  0x80   :  { %729 = vmatprep.subr.mxu1 %v287_v45  ;;  %653 = vmatpush1.msra.mxu0 %v94_v46  ;;  %v389_v45 = vld [vmem:[#allocation5 + $0xa38] sm:$0xff]  ;;  %v196_v46 = vld [vmem:[#allocation5 + $0x430] sm:$0xff] }
  0x81   :  { %730 = vmatpush1.msra.mxu1 %v286_v47  ;;  %654 = vmatprep.subr.mxu0 %v89_v48  ;;  %v388_v47 = vld [vmem:[#allocation5 + $0xa30] sm:$0xff]  ;;  %v191_v48 = vld [vmem:[#allocation5 + $0x408] sm:$0xff] }
  0x82   :  { %731 = vmatprep.subr.mxu1 %v281_v49  ;;  %655 = vmatpush1.msra.mxu0 %v88_v50  ;;  %v383_v49 = vld [vmem:[#allocation5 + $0xa08] sm:$0xff]  ;;  %v190_v50 = vld [vmem:[#allocation5 + $0x400] sm:$0xff] }
  0x83   :  { %732 = vmatpush1.msra.mxu1 %v280_v51  ;;  %656 = vmatprep.subr.mxu0 %v83_v52  ;;  %v382_v51 = vld [vmem:[#allocation5 + $0xa00] sm:$0xff]  ;;  %v185_v52 = vld [vmem:[#allocation5 + $0x3d8] sm:$0xff] }
  0x84   :  { %733 = vmatprep.subr.mxu1 %v275_v53  ;;  %657 = vmatpush1.msra.mxu0 %v82_v54  ;;  %v377_v53 = vld [vmem:[#allocation5 + $0x9d8] sm:$0xff]  ;;  %v184_v54 = vld [vmem:[#allocation5 + $0x3d0] sm:$0xff] }
  0x85   :  { %734 = vmatpush1.msra.mxu1 %v274_v55  ;;  %658 = vmatprep.subr.mxu0 %v77_v56  ;;  %v376_v55 = vld [vmem:[#allocation5 + $0x9d0] sm:$0xff]  ;;  %v179_v56 = vld [vmem:[#allocation5 + $0x3a8] sm:$0xff] }
  0x86   :  { %735 = vmatprep.subr.mxu1 %v269_v57  ;;  %659 = vmatpush1.msra.mxu0 %v76_v58  ;;  %v371_v57 = vld [vmem:[#allocation5 + $0x9a8] sm:$0xff]  ;;  %v178_v58 = vld [vmem:[#allocation5 + $0x3a0] sm:$0xff] }
  0x87   :  { %736 = vmatpush1.msra.mxu1 %v268_v59  ;;  %660 = vmatprep.subr.mxu0 %v71_v60  ;;  %v370_v59 = vld [vmem:[#allocation5 + $0x9a0] sm:$0xff]  ;;  %v1122_v60 = vld [vmem:[#allocation2 + $0x28] sm:$0xff] }
  0x88   :  { %737 = vmatprep.subr.mxu1 %v263_v61  ;;  %661 = vmatpush1.msra.mxu0 %v70_v62  ;;  %v173_v61 = vld [vmem:[#allocation5 + $0x378] sm:$0xff] }
  0x89   :  { %738 = vmatpush1.msra.mxu1 %v262_v0  ;;  %662 = vmatprep.subr.mxu0 %v65_v3  ;;  %v365_v62 = vld [vmem:[#allocation5 + $0x978] sm:$0xff]  ;;  %v1124_v0 = vld [vmem:[#allocation2 + $0x20] sm:$0xff]  ;;  %v172_v3 = vld [vmem:[#allocation5 + $0x370] sm:$0xff] }
  0x8a   :  { %739 = vmatprep.subr.mxu1 %v257_v4  ;;  %663 = vmatpush1.msra.mxu0 %v64_v6  ;;  %v364_v4 = vld [vmem:[#allocation5 + $0x970] sm:$0xff]  ;;  %v1127_v6 = vld [vmem:[#allocation2 + $0x38] sm:$0xff] }
  0x8b   :  { %740 = vmatpush1.msra.mxu1 %v256_v7  ;;  %664 = vmatprep.subr.mxu0 %v251_v8  ;;  %v167_v7 = vld [vmem:[#allocation5 + $0x348] sm:$0xff] }
  0x8c   :  { %741 = vmatprep.subr.mxu1 %v443_v9  ;;  %665 = vmatpush2.msra.mxu0 %v250_v10  ;;  %v359_v8 = vld [vmem:[#allocation5 + $0x948] sm:$0xff]  ;;  %v1130_v9 = vld [vmem:[#allocation2 + $0x30] sm:$0xff]  ;;  %v166_v10 = vld [vmem:[#allocation5 + $0x340] sm:$0xff] }
  0x8d   :  { %742 = vmatpush2.msra.mxu1 %v442_v11  ;;  %666 = vmatprep.subr.mxu0 %v245_v12  ;;  %v358_v11 = vld [vmem:[#allocation5 + $0x940] sm:$0xff]  ;;  %v161_v12 = vld [vmem:[#allocation5 + $0x318] sm:$0xff] }
  0x8e   :  { %743 = vmatprep.subr.mxu1 %v437_v13  ;;  %667 = vmatpush2.msra.mxu0 %v244_v14  ;;  %v353_v13 = vld [vmem:[#allocation5 + $0x918] sm:$0xff]  ;;  %v160_v14 = vld [vmem:[#allocation5 + $0x310] sm:$0xff] }
  0x8f   :  { %744 = vmatpush2.msra.mxu1 %v436_v15  ;;  %668 = vmatprep.subr.mxu0 %v239_v16  ;;  %v352_v15 = vld [vmem:[#allocation5 + $0x910] sm:$0xff]  ;;  %v157_v16 = vld [vmem:[#allocation5 + $0x2f8] sm:$0xff] }
  0x90   :  { %745 = vmatprep.subr.mxu1 %v431_v17  ;;  %669 = vmatpush2.msra.mxu0 %v238_v18  ;;  %v349_v17 = vld [vmem:[#allocation5 + $0x8f8] sm:$0xff]  ;;  %v156_v18 = vld [vmem:[#allocation5 + $0x2f0] sm:$0xff] }
  0x91   :  { %746 = vmatpush2.msra.mxu1 %v430_v19  ;;  %670 = vmatprep.subr.mxu0 %v233_v20  ;;  %v348_v19 = vld [vmem:[#allocation5 + $0x8f0] sm:$0xff]  ;;  %v151_v20 = vld [vmem:[#allocation5 + $0x2c8] sm:$0xff] }
  0x92   :  { %747 = vmatprep.subr.mxu1 %v425_v21  ;;  %671 = vmatpush2.msra.mxu0 %v232_v22  ;;  %v343_v21 = vld [vmem:[#allocation5 + $0x8c8] sm:$0xff]  ;;  %v150_v22 = vld [vmem:[#allocation5 + $0x2c0] sm:$0xff] }
  0x93   :  { %748 = vmatpush2.msra.mxu1 %v424_v23  ;;  %672 = vmatprep.subr.mxu0 %v227_v24  ;;  %v342_v23 = vld [vmem:[#allocation5 + $0x8c0] sm:$0xff]  ;;  %v145_v24 = vld [vmem:[#allocation5 + $0x298] sm:$0xff] }
  0x94   :  { %749 = vmatprep.subr.mxu1 %v419_v25  ;;  %673 = vmatpush2.msra.mxu0 %v226_v26  ;;  %v144_v25 = vld [vmem:[#allocation5 + $0x290] sm:$0xff]  ;;  %v139_v26 = vld [vmem:[#allocation5 + $0x268] sm:$0xff] }
  0x95   :  { %750 = vmatpush2.msra.mxu1 %v418_v27  ;;  %674 = vmatprep.subr.mxu0 %v221_v28  ;;  %v138_v27 = vld [vmem:[#allocation5 + $0x260] sm:$0xff] }
  0x96   :  { %751 = vmatprep.subr.mxu1 %v413_v29  ;;  %675 = vmatpush2.msra.mxu0 %v220_v30  ;;  %v330_v28 = vld [vmem:[#allocation5 + $0x860] sm:$0xff]  ;;  %v325_v29 = vld [vmem:[#allocation5 + $0x838] sm:$0xff]  ;;  %v132_v30 = vld [vmem:[#allocation5 + $0x230] sm:$0xff] }
  0x97   :  { %752 = vmatpush2.msra.mxu1 %v412_v31  ;;  %676 = vmatprep.subr.mxu0 %v215_v32  ;;  %v324_v31 = vld [vmem:[#allocation5 + $0x830] sm:$0xff]  ;;  %v127_v32 = vld [vmem:[#allocation5 + $0x208] sm:$0xff] }
  0x98   :  { %753 = vmatprep.subr.mxu1 %v407_v33  ;;  %677 = vmatpush2.msra.mxu0 %v214_v34  ;;  %v319_v33 = vld [vmem:[#allocation5 + $0x808] sm:$0xff]  ;;  %v126_v34 = vld [vmem:[#allocation5 + $0x200] sm:$0xff] }
  0x99   :  { %754 = vmatpush2.msra.mxu1 %v406_v35  ;;  %678 = vmatprep.subr.mxu0 %v209_v36  ;;  %v318_v35 = vld [vmem:[#allocation5 + $0x800] sm:$0xff]  ;;  %v121_v36 = vld [vmem:[#allocation5 + $0x1d8] sm:$0xff] }
  0x9a   :  { %755 = vmatprep.subr.mxu1 %v401_v37  ;;  %679 = vmatpush2.msra.mxu0 %v208_v38  ;;  %v313_v37 = vld [vmem:[#allocation5 + $0x7d8] sm:$0xff]  ;;  %v120_v38 = vld [vmem:[#allocation5 + $0x1d0] sm:$0xff] }
  0x9b   :  { %756 = vmatpush2.msra.mxu1 %v400_v39  ;;  %680 = vmatprep.subr.mxu0 %v203_v40  ;;  %v312_v39 = vld [vmem:[#allocation5 + $0x7d0] sm:$0xff]  ;;  %v115_v40 = vld [vmem:[#allocation5 + $0x1a8] sm:$0xff] }
  0x9c   :  { %757 = vmatprep.subr.mxu1 %v395_v41  ;;  %681 = vmatpush2.msra.mxu0 %v202_v42  ;;  %v307_v41 = vld [vmem:[#allocation5 + $0x7a8] sm:$0xff]  ;;  %v114_v42 = vld [vmem:[#allocation5 + $0x1a0] sm:$0xff] }
  0x9d   :  { %758 = vmatpush2.msra.mxu1 %v394_v43  ;;  %682 = vmatprep.subr.mxu0 %v197_v44  ;;  %v306_v43 = vld [vmem:[#allocation5 + $0x7a0] sm:$0xff]  ;;  %v109_v44 = vld [vmem:[#allocation5 + $0x178] sm:$0xff] }
  0x9e   :  { %759 = vmatprep.subr.mxu1 %v389_v45  ;;  %683 = vmatpush2.msra.mxu0 %v196_v46  ;;  %v301_v45 = vld [vmem:[#allocation5 + $0x778] sm:$0xff]  ;;  %v108_v46 = vld [vmem:[#allocation5 + $0x170] sm:$0xff] }
  0x9f   :  { %760 = vmatpush2.msra.mxu1 %v388_v47  ;;  %684 = vmatprep.subr.mxu0 %v191_v48  ;;  %v300_v47 = vld [vmem:[#allocation5 + $0x770] sm:$0xff]  ;;  %v103_v48 = vld [vmem:[#allocation5 + $0x148] sm:$0xff] }
  0xa0   :  { %761 = vmatprep.subr.mxu1 %v383_v49  ;;  %685 = vmatpush2.msra.mxu0 %v190_v50  ;;  %v295_v49 = vld [vmem:[#allocation5 + $0x748] sm:$0xff]  ;;  %v102_v50 = vld [vmem:[#allocation5 + $0x140] sm:$0xff] }
  0xa1   :  { %762 = vmatpush2.msra.mxu1 %v382_v51  ;;  %686 = vmatprep.subr.mxu0 %v185_v52  ;;  %v294_v51 = vld [vmem:[#allocation5 + $0x740] sm:$0xff]  ;;  %v97_v52 = vld [vmem:[#allocation5 + $0x118] sm:$0xff] }
  0xa2   :  { %763 = vmatprep.subr.mxu1 %v377_v53  ;;  %687 = vmatpush2.msra.mxu0 %v184_v54  ;;  %v289_v53 = vld [vmem:[#allocation5 + $0x718] sm:$0xff]  ;;  %v96_v54 = vld [vmem:[#allocation5 + $0x110] sm:$0xff] }
  0xa3   :  { %764 = vmatpush2.msra.mxu1 %v376_v55  ;;  %688 = vmatprep.subr.mxu0 %v179_v56  ;;  %v288_v55 = vld [vmem:[#allocation5 + $0x710] sm:$0xff]  ;;  %v91_v56 = vld [vmem:[#allocation5 + $0xe8] sm:$0xff] }
  0xa4   :  { %765 = vmatprep.subr.mxu1 %v371_v57  ;;  %689 = vmatpush2.msra.mxu0 %v178_v58  ;;  %v283_v57 = vld [vmem:[#allocation5 + $0x6e8] sm:$0xff]  ;;  %v90_v58 = vld [vmem:[#allocation5 + $0xe0] sm:$0xff] }
  0xa5   :  { %766 = vmatpush2.msra.mxu1 %v370_v59  ;;  %548 = vmatprep.mubr.f32.mxu0 %v1122_v60  ;;  %v282_v59 = vld [vmem:[#allocation5 + $0x6e0] sm:$0xff] }
  0xa6   :  { %690 = vmatprep.subr.mxu0 %v173_v61  ;;  %767 = vmatprep.subr.mxu1 %v365_v62  ;;  %v85_v61 = vld [vmem:[#allocation5 + $0xb8] sm:$0xff] }
  0xa7   :  { %549 = vmatmul.mubr.f32.gmra.mxu0 %v1124_v0  ;;  %768 = vmatpush2.msra.mxu1 %v364_v4  ;;  %v277_v62 = vld [vmem:[#allocation5 + $0x6b8] sm:$0xff]  ;;  %v276_v4 = vld [vmem:[#allocation5 + $0x6b0] sm:$0xff] }
  0xa8   :  { %691 = vmatpush2.msra.mxu0 %v172_v3  ;;  %625 = vmatprep.mubr.f32.mxu1 %v1127_v6  ;;  %v84_v3 = vld [vmem:[#allocation5 + $0xb0] sm:$0xff] }
  0xa9   :  { %692 = vmatprep.subr.mxu0 %v167_v7  ;;  %769 = vmatprep.subr.mxu1 %v359_v8  ;;  %v79_v7 = vld [vmem:[#allocation5 + $0x88] sm:$0xff] }
  0xaa   :  { %626 = vmatmul.mubr.f32.gmra.mxu1 %v1130_v9  ;;  %693 = vmatpush2.msra.mxu0 %v166_v10  ;;  %v271_v8 = vld [vmem:[#allocation5 + $0x688] sm:$0xff]  ;;  %v78_v10 = vld [vmem:[#allocation5 + $0x80] sm:$0xff] }
  0xab   :  { %770 = vmatpush2.msra.mxu1 %v358_v11  ;;  %694 = vmatprep.subr.mxu0 %v161_v12  ;;  %v270_v11 = vld [vmem:[#allocation5 + $0x680] sm:$0xff]  ;;  %v73_v12 = vld [vmem:[#allocation5 + $0x58] sm:$0xff] }
  0xac   :  { %771 = vmatprep.subr.mxu1 %v353_v13  ;;  %695 = vmatpush2.msra.mxu0 %v160_v14  ;;  %v265_v13 = vld [vmem:[#allocation5 + $0x658] sm:$0xff]  ;;  %v72_v14 = vld [vmem:[#allocation5 + $0x50] sm:$0xff] }
  0xad   :  { %696 = vmatprep.mubr.f32.mxu0 %v1110_v63  ;;  %772 = vmatpush2.msra.mxu1 %v352_v15  ;;  %v337_v63 = vld [vmem:[#allocation5 + $0x898] sm:$0xff]  ;;  %v264_v15 = vld [vmem:[#allocation5 + $0x650] sm:$0xff] }
  0xae   :  { %697 = vmatmul.mubr.f32.vlgmr.msra.gmra.mxu0 %v1112_v1  ;;  %773 = vmatprep.mubr.f32.mxu1 %v1114_v2  ;;  %v336_v1 = vld [vmem:[#allocation5 + $0x890] sm:$0xff]  ;;  %v331_v2 = vld [vmem:[#allocation5 + $0x868] sm:$0xff] }
  0xaf   :  { %786 = vmatprep.subr.mxu0 %v157_v16  ;;  %863 = vmatprep.subr.mxu1 %v349_v17  ;;  %v67_v16 = vld [vmem:[#allocation5 + $0x28] sm:$0xff] }
  0xb0   :  { %774 = vmatmul.mubr.f32.vlgmr.msra.gmra.mxu1 %v1117_v5  ;;  %787 = vmatpush1.msra.mxu0 %v156_v18  ;;  %v133_v5 = vld [vmem:[#allocation5 + $0x238] sm:$0xff]  ;;  %v259_v17 = vld [vmem:[#allocation5 + $0x628] sm:$0xff]  ;;  %v66_v18 = vld [vmem:[#allocation5 + $0x20] sm:$0xff] }
  0xb1   :  { %864 = vmatpush1.msra.mxu1 %v348_v19  ;;  %788 = vmatprep.subr.mxu0 %v151_v20  ;;  %v258_v19 = vld [vmem:[#allocation5 + $0x620] sm:$0xff]  ;;  %v253_v20 = vld [vmem:[#allocation5 + $0x5f8] sm:$0xff] }
  0xb2   :  { %865 = vmatprep.subr.mxu1 %v343_v21  ;;  %789 = vmatpush1.msra.mxu0 %v150_v22  ;;  %v445_v21 = vld [vmem:[#allocation5 + $0xbf8] sm:$0xff]  ;;  %v252_v22 = vld [vmem:[#allocation5 + $0x5f0] sm:$0xff] }
  0xb3   :  { %866 = vmatpush1.msra.mxu1 %v342_v23  ;;  %790 = vmatprep.subr.mxu0 %v145_v24  ;;  %v444_v23 = vld [vmem:[#allocation5 + $0xbf0] sm:$0xff]  ;;  %v247_v24 = vld [vmem:[#allocation5 + $0x5c8] sm:$0xff] }
  0xb4   :  { %867 = vmatprep.subr.mxu1 %v337_v63  ;;  %791 = vmatpush1.msra.mxu0 %v144_v25  ;;  %v439_v63 = vld [vmem:[#allocation5 + $0xbc8] sm:$0xff]  ;;  %v246_v25 = vld [vmem:[#allocation5 + $0x5c0] sm:$0xff] }
  0xb5   :  { %868 = vmatpush1.msra.mxu1 %v336_v1  ;;  %792 = vmatprep.subr.mxu0 %v139_v26  ;;  %v438_v1 = vld [vmem:[#allocation5 + $0xbc0] sm:$0xff]  ;;  %v241_v26 = vld [vmem:[#allocation5 + $0x598] sm:$0xff] }
  0xb6   :  { %869 = vmatprep.subr.mxu1 %v331_v2  ;;  %793 = vmatpush1.msra.mxu0 %v138_v27  ;;  %v433_v2 = vld [vmem:[#allocation5 + $0xb98] sm:$0xff]  ;;  %v240_v27 = vld [vmem:[#allocation5 + $0x590] sm:$0xff] }
  0xb7   :  { %870 = vmatpush1.msra.mxu1 %v330_v28  ;;  %794 = vmatprep.subr.mxu0 %v133_v5  ;;  %v432_v28 = vld [vmem:[#allocation5 + $0xb90] sm:$0xff]  ;;  %v235_v5 = vld [vmem:[#allocation5 + $0x568] sm:$0xff] }
  0xb8   :  { %871 = vmatprep.subr.mxu1 %v325_v29  ;;  %795 = vmatpush1.msra.mxu0 %v132_v30  ;;  %v427_v29 = vld [vmem:[#allocation5 + $0xb68] sm:$0xff]  ;;  %v234_v30 = vld [vmem:[#allocation5 + $0x560] sm:$0xff] }
  0xb9   :  { %872 = vmatpush1.msra.mxu1 %v324_v31  ;;  %796 = vmatprep.subr.mxu0 %v127_v32  ;;  %v426_v31 = vld [vmem:[#allocation5 + $0xb60] sm:$0xff]  ;;  %v229_v32 = vld [vmem:[#allocation5 + $0x538] sm:$0xff] }
  0xba   :  { %873 = vmatprep.subr.mxu1 %v319_v33  ;;  %797 = vmatpush1.msra.mxu0 %v126_v34  ;;  %v421_v33 = vld [vmem:[#allocation5 + $0xb38] sm:$0xff]  ;;  %v228_v34 = vld [vmem:[#allocation5 + $0x530] sm:$0xff] }
  0xbb   :  { %874 = vmatpush1.msra.mxu1 %v318_v35  ;;  %798 = vmatprep.subr.mxu0 %v121_v36  ;;  %v420_v35 = vld [vmem:[#allocation5 + $0xb30] sm:$0xff]  ;;  %v223_v36 = vld [vmem:[#allocation5 + $0x508] sm:$0xff] }
  0xbc   :  { %875 = vmatprep.subr.mxu1 %v313_v37  ;;  %799 = vmatpush1.msra.mxu0 %v120_v38  ;;  %v415_v37 = vld [vmem:[#allocation5 + $0xb08] sm:$0xff]  ;;  %v222_v38 = vld [vmem:[#allocation5 + $0x500] sm:$0xff] }
  0xbd   :  { %876 = vmatpush1.msra.mxu1 %v312_v39  ;;  %800 = vmatprep.subr.mxu0 %v115_v40  ;;  %v414_v39 = vld [vmem:[#allocation5 + $0xb00] sm:$0xff]  ;;  %v217_v40 = vld [vmem:[#allocation5 + $0x4d8] sm:$0xff] }
  0xbe   :  { %877 = vmatprep.subr.mxu1 %v307_v41  ;;  %801 = vmatpush1.msra.mxu0 %v114_v42  ;;  %v409_v41 = vld [vmem:[#allocation5 + $0xad8] sm:$0xff]  ;;  %v216_v42 = vld [vmem:[#allocation5 + $0x4d0] sm:$0xff] }
  0xbf   :  { %878 = vmatpush1.msra.mxu1 %v306_v43  ;;  %802 = vmatprep.subr.mxu0 %v109_v44  ;;  %v408_v43 = vld [vmem:[#allocation5 + $0xad0] sm:$0xff]  ;;  %v211_v44 = vld [vmem:[#allocation5 + $0x4a8] sm:$0xff] }
  0xc0   :  { %879 = vmatprep.subr.mxu1 %v301_v45  ;;  %803 = vmatpush1.msra.mxu0 %v108_v46  ;;  %v403_v45 = vld [vmem:[#allocation5 + $0xaa8] sm:$0xff]  ;;  %v210_v46 = vld [vmem:[#allocation5 + $0x4a0] sm:$0xff] }
  0xc1   :  { %880 = vmatpush1.msra.mxu1 %v300_v47  ;;  %804 = vmatprep.subr.mxu0 %v103_v48  ;;  %v402_v47 = vld [vmem:[#allocation5 + $0xaa0] sm:$0xff]  ;;  %v205_v48 = vld [vmem:[#allocation5 + $0x478] sm:$0xff] }
  0xc2   :  { %881 = vmatprep.subr.mxu1 %v295_v49  ;;  %805 = vmatpush1.msra.mxu0 %v102_v50  ;;  %v397_v49 = vld [vmem:[#allocation5 + $0xa78] sm:$0xff]  ;;  %v204_v50 = vld [vmem:[#allocation5 + $0x470] sm:$0xff] }
  0xc3   :  { %882 = vmatpush1.msra.mxu1 %v294_v51  ;;  %806 = vmatprep.subr.mxu0 %v97_v52  ;;  %v396_v51 = vld [vmem:[#allocation5 + $0xa70] sm:$0xff]  ;;  %v199_v52 = vld [vmem:[#allocation5 + $0x448] sm:$0xff] }
  0xc4   :  { %883 = vmatprep.subr.mxu1 %v289_v53  ;;  %807 = vmatpush1.msra.mxu0 %v96_v54  ;;  %v391_v53 = vld [vmem:[#allocation5 + $0xa48] sm:$0xff]  ;;  %v198_v54 = vld [vmem:[#allocation5 + $0x440] sm:$0xff] }
  0xc5   :  { %884 = vmatpush1.msra.mxu1 %v288_v55  ;;  %808 = vmatprep.subr.mxu0 %v91_v56  ;;  %v390_v55 = vld [vmem:[#allocation5 + $0xa40] sm:$0xff]  ;;  %v193_v56 = vld [vmem:[#allocation5 + $0x418] sm:$0xff] }
  0xc6   :  { %885 = vmatprep.subr.mxu1 %v283_v57  ;;  %809 = vmatpush1.msra.mxu0 %v90_v58  ;;  %v385_v57 = vld [vmem:[#allocation5 + $0xa18] sm:$0xff]  ;;  %v192_v58 = vld [vmem:[#allocation5 + $0x410] sm:$0xff] }
  0xc7   :  { %886 = vmatpush1.msra.mxu1 %v282_v59  ;;  %810 = vmatprep.subr.mxu0 %v85_v61  ;;  %v384_v59 = vld [vmem:[#allocation5 + $0xa10] sm:$0xff]  ;;  %v187_v61 = vld [vmem:[#allocation5 + $0x3e8] sm:$0xff] }
  0xc8   :  { %887 = vmatprep.subr.mxu1 %v277_v62  ;;  %811 = vmatpush1.msra.mxu0 %v84_v3  ;;  %v379_v62 = vld [vmem:[#allocation5 + $0x9e8] sm:$0xff]  ;;  %v186_v3 = vld [vmem:[#allocation5 + $0x3e0] sm:$0xff] }
  0xc9   :  { %888 = vmatpush1.msra.mxu1 %v276_v4  ;;  %812 = vmatprep.subr.mxu0 %v79_v7  ;;  %v378_v4 = vld [vmem:[#allocation5 + $0x9e0] sm:$0xff]  ;;  %v181_v7 = vld [vmem:[#allocation5 + $0x3b8] sm:$0xff] }
  0xca   :  { %889 = vmatprep.subr.mxu1 %v271_v8  ;;  %813 = vmatpush1.msra.mxu0 %v78_v10  ;;  %v373_v8 = vld [vmem:[#allocation5 + $0x9b8] sm:$0xff]  ;;  %v180_v10 = vld [vmem:[#allocation5 + $0x3b0] sm:$0xff] }
  0xcb   :  { %890 = vmatpush1.msra.mxu1 %v270_v11  ;;  %814 = vmatprep.subr.mxu0 %v73_v12  ;;  %v372_v11 = vld [vmem:[#allocation5 + $0x9b0] sm:$0xff]  ;;  %v175_v12 = vld [vmem:[#allocation5 + $0x388] sm:$0xff] }
  0xcc   :  { %891 = vmatprep.subr.mxu1 %v265_v13  ;;  %815 = vmatpush1.msra.mxu0 %v72_v14  ;;  %v367_v13 = vld [vmem:[#allocation5 + $0x988] sm:$0xff]  ;;  %v174_v14 = vld [vmem:[#allocation5 + $0x380] sm:$0xff] }
  0xcd   :  { %892 = vmatpush1.msra.mxu1 %v264_v15  ;;  %816 = vmatprep.subr.mxu0 %v67_v16  ;;  %v366_v15 = vld [vmem:[#allocation5 + $0x980] sm:$0xff]  ;;  %v169_v16 = vld [vmem:[#allocation5 + $0x358] sm:$0xff] }
  0xce   :  { %893 = vmatprep.subr.mxu1 %v259_v17  ;;  %817 = vmatpush1.msra.mxu0 %v66_v18  ;;  %v361_v17 = vld [vmem:[#allocation5 + $0x958] sm:$0xff]  ;;  %v168_v18 = vld [vmem:[#allocation5 + $0x350] sm:$0xff] }
  0xcf   :  { %894 = vmatpush1.msra.mxu1 %v258_v19  ;;  %818 = vmatprep.subr.mxu0 %v253_v20  ;;  %v360_v19 = vld [vmem:[#allocation5 + $0x950] sm:$0xff]  ;;  %v163_v20 = vld [vmem:[#allocation5 + $0x328] sm:$0xff] }
  0xd0   :  { %895 = vmatprep.subr.mxu1 %v445_v21  ;;  %819 = vmatpush2.msra.mxu0 %v252_v22  ;;  %v355_v21 = vld [vmem:[#allocation5 + $0x928] sm:$0xff]  ;;  %v162_v22 = vld [vmem:[#allocation5 + $0x320] sm:$0xff] }
  0xd1   :  { %896 = vmatpush2.msra.mxu1 %v444_v23  ;;  %820 = vmatprep.subr.mxu0 %v247_v24  ;;  %v354_v23 = vld [vmem:[#allocation5 + $0x920] sm:$0xff]  ;;  %v981_v24 = vld [vmem:[#allocation2 + $0x8] sm:$0xff] }
  0xd2   :  { %897 = vmatprep.subr.mxu1 %v439_v63  ;;  %821 = vmatpush2.msra.mxu0 %v246_v25  ;;  %v982_v63 = vld [vmem:[#allocation2 + $0x18] sm:$0xff]  ;;  %v983_v25 = vld [vmem:[#allocation2] sm:$0xff] }
  0xd3   :  { %898 = vmatpush2.msra.mxu1 %v438_v1  ;;  %822 = vmatprep.subr.mxu0 %v241_v26  ;;  %v984_v1 = vld [vmem:[#allocation2 + $0x10] sm:$0xff]  ;;  %v448_v26 = vlaneseq }
  0xd4   :  { %899 = vmatprep.subr.mxu1 %v433_v2  ;;  %823 = vmatpush2.msra.mxu0 %v240_v27 }
  0xd5   :  { %900 = vmatpush2.msra.mxu1 %v432_v28  ;;  %824 = vmatprep.subr.mxu0 %v235_v5  ;;  %v449_v2 = vshrl.u32 %v448_v26, 7  ;;  %v446_v28 = vld [vmem:[#allocation7] sm:$0x3f] }
  0xd6   :  { %901 = vmatprep.subr.mxu1 %v427_v29  ;;  %825 = vmatpush2.msra.mxu0 %v234_v30 }
  0xd7   :  { %902 = vmatpush2.msra.mxu1 %v426_v31  ;;  %826 = vmatprep.subr.mxu0 %v229_v32  ;;  %v450_v27 = vsub.s32 0, %v449_v2  ;;  %v454_v5 = vsub.s32 1, %v449_v2 }
  0xd8   :  { %903 = vmatprep.subr.mxu1 %v421_v33  ;;  %827 = vmatpush2.msra.mxu0 %v228_v34 }
  0xd9   :  { %904 = vmatpush2.msra.mxu1 %v420_v35  ;;  %828 = vmatprep.subr.mxu0 %v223_v36  ;;  %v451_v29 = vrot.slane %v446_v28, %v450_v27  ;;  %v455_v30 = vrot.slane %v446_v28, %v454_v5 }
  0xda   :  { %905 = vmatprep.subr.mxu1 %v415_v37  ;;  %829 = vmatpush2.msra.mxu0 %v222_v38  ;;  %v458_v37 = vsub.s32 2, %v449_v2 }
  0xdb   :  { %906 = vmatpush2.msra.mxu1 %v414_v39  ;;  %830 = vmatprep.subr.mxu0 %v217_v40  ;;  %v462_v39 = vsub.s32 3, %v449_v2 }
  0xdc   :  { %907 = vmatprep.subr.mxu1 %v409_v41  ;;  %831 = vmatpush2.msra.mxu0 %v216_v42 }
  0xdd   :  { %908 = vmatpush2.msra.mxu1 %v408_v43  ;;  %832 = vmatprep.subr.mxu0 %v211_v44  ;;  %v459_v43 = vrot.slane %v446_v28, %v458_v37 }
  0xde   :  { %909 = vmatprep.subr.mxu1 %v403_v45  ;;  %833 = vmatpush2.msra.mxu0 %v210_v46  ;;  %v463_v46 = vrot.slane %v446_v28, %v462_v39 }
  0xdf   :  { %910 = vmatpush2.msra.mxu1 %v402_v47  ;;  %834 = vmatprep.subr.mxu0 %v205_v48 }
  0xe0   :  { %911 = vmatprep.subr.mxu1 %v397_v49  ;;  %835 = vmatpush2.msra.mxu0 %v204_v50 }
  0xe1   :  { %912 = vmatpush2.msra.mxu1 %v396_v51  ;;  %836 = vmatprep.subr.mxu0 %v199_v52 }
  0xe2   :  { %913 = vmatprep.subr.mxu1 %v391_v53  ;;  %837 = vmatpush2.msra.mxu0 %v198_v54 }
  0xe3   :  { %914 = vmatpush2.msra.mxu1 %v390_v55  ;;  %838 = vmatprep.subr.mxu0 %v193_v56 }
  0xe4   :  { %915 = vmatprep.subr.mxu1 %v385_v57  ;;  %839 = vmatpush2.msra.mxu0 %v192_v58  ;;  %v466_v58 = vsub.s32 4, %v449_v2 }
  0xe5   :  { %916 = vmatpush2.msra.mxu1 %v384_v59  ;;  %840 = vmatprep.subr.mxu0 %v187_v61 }
  0xe6   :  { %917 = vmatprep.subr.mxu1 %v379_v62  ;;  %841 = vmatpush2.msra.mxu0 %v186_v3  ;;  %v470_v62 = vsub.s32 5, %v449_v2 }
  0xe7   :  { %918 = vmatpush2.msra.mxu1 %v378_v4  ;;  %842 = vmatprep.subr.mxu0 %v181_v7  ;;  %v467_v7 = vrot.slane %v446_v28, %v466_v58 }
  0xe8   :  { %919 = vmatprep.subr.mxu1 %v373_v8  ;;  %702 = vmatprep.mubr.f32.mxu0 %v1122_v60 }
  0xe9   :  { %843 = vmatpush2.msra.mxu0 %v180_v10  ;;  %920 = vmatpush2.msra.mxu1 %v372_v11  ;;  %v471_v10 = vrot.slane %v446_v28, %v470_v62 }
  0xea   :  { %703 = vmatmul.mubr.f32.gmra.mxu0 %v1124_v0  ;;  %844 = vmatprep.subr.mxu0 %v175_v12 }
  0xeb   :  { %921 = vmatprep.subr.mxu1 %v367_v13  ;;  %779 = vmatprep.mubr.f32.mxu1 %v1127_v6 }
  0xec   :  { %845 = vmatpush2.msra.mxu0 %v174_v14  ;;  %922 = vmatpush2.msra.mxu1 %v366_v15 }
  0xed   :  { %846 = vmatprep.subr.mxu0 %v169_v16  ;;  %780 = vmatmul.mubr.f32.gmra.mxu1 %v1130_v9 }
  0xee   :  { %923 = vmatprep.subr.mxu1 %v361_v17  ;;  %847 = vmatpush2.msra.mxu0 %v168_v18 }
  0xef   :  { %924 = vmatpush2.msra.mxu1 %v360_v19  ;;  %848 = vmatprep.subr.mxu0 %v163_v20 }
  0xf0   :  { %925 = vmatprep.subr.mxu1 %v355_v21  ;;  %849 = vmatpush2.msra.mxu0 %v162_v22 }
  0xf1   :  { %850 = vmatprep.mubr.f32.mxu0 %v981_v24  ;;  %926 = vmatpush2.msra.mxu1 %v354_v23 }
  0xf2   :  { %927 = vmatprep.mubr.f32.mxu1 %v982_v63  ;;  %851 = vmatmul.mubr.f32.vlgmr.msra.gmra.mxu0 %v983_v25 }
  0xf3   :  { %928 = vmatmul.mubr.f32.vlgmr.msra.gmra.mxu1 %v984_v1  ;;  %856 = vmatprep.mubr.f32.mxu0 %v1122_v60 }
  0xf4   :  { %933 = vmatprep.mubr.f32.mxu1 %v1127_v6 }
  0xf6   :  { %857 = vmatmul.mubr.f32.gmra.mxu0 %v1124_v0 }
  0xf7   :  { %934 = vmatmul.mubr.f32.gmra.mxu1 %v1130_v9 }
 0x12a   :  { %v544_v31 = vpop.f32.mrf.mxu0 }
 0x12b   :  { %v545_v32 = vadd.f32 %v544_v31, %v451_v29 }
 0x12c   :  { %v621_v33 = vpop.f32.mrf.mxu1  ;;  %v546_v34 = vpop.f32.mrf.mxu0 }
 0x12d   :  { %v622_v35 = vadd.f32 %v621_v33, %v545_v32  ;;  %v547_v36 = vadd.f32 %v546_v34, %v455_v30 }
 0x12e   :  { %v623_v60 = vpop.f32.mrf.mxu1 }
 0x12f   :  { %940 = vst [vmem:[#allocation8] sm:$0xff] %v622_v35  ;;  %v624_v6 = vadd.f32 %v623_v60, %v547_v36 }
 0x131   :  { %941 = vst [vmem:[#allocation8 + $0x8] sm:$0xff] %v624_v6 }
 0x167   :  { %v550_v0 = vpop.f32.mrf.mxu0 }
 0x168   :  { %v551_v9 = vadd.f32 %v550_v0, %v451_v29 }
 0x169   :  { %v552_v38 = vpop.f32.mrf.mxu0 }
 0x16a   :  { %v553_v40 = vadd.f32 %v552_v38, %v455_v30  ;;  %v627_v41 = vpop.f32.mrf.mxu1 }
 0x16b   :  { %v628_v42 = vadd.f32 %v627_v41, %v551_v9 }
 0x16c   :  { %v629_v44 = vpop.f32.mrf.mxu1 }
 0x16d   :  { %943 = vst [vmem:[#allocation8 + $0x18] sm:$0xff] %v628_v42  ;;  %v630_v45 = vadd.f32 %v629_v44, %v553_v40 }
 0x16e   :  { %v698_v47 = vpop.f32.mrf.mxu0 }
 0x16f   :  { %944 = vst [vmem:[#allocation8 + $0x20] sm:$0xff] %v630_v45  ;;  %v699_v48 = vadd.f32 %v698_v47, %v459_v43 }
 0x170   :  { %v775_v49 = vpop.f32.mrf.mxu1  ;;  %v700_v50 = vpop.f32.mrf.mxu0 }
 0x171   :  { %v776_v51 = vadd.f32 %v775_v49, %v699_v48  ;;  %v701_v52 = vadd.f32 %v700_v50, %v463_v46 }
 0x172   :  { %v777_v53 = vpop.f32.mrf.mxu1 }
 0x173   :  { %942 = vst [vmem:[#allocation8 + $0x10] sm:$0xff] %v776_v51  ;;  %v778_v54 = vadd.f32 %v777_v53, %v701_v52 }
 0x175   :  { %947 = vst [vmem:[#allocation8 + $0x30] sm:$0xff] %v778_v54 }
 0x1aa   :  { %v704_v55 = vpop.f32.mrf.mxu0 }
 0x1ab   :  { %v705_v56 = vadd.f32 %v704_v55, %v459_v43 }
 0x1ac   :  { %v706_v57 = vpop.f32.mrf.mxu0 }
 0x1ad   :  { %v707_v59 = vadd.f32 %v706_v57, %v463_v46  ;;  %v781_v61 = vpop.f32.mrf.mxu1 }
 0x1ae   :  { %v782_v3 = vadd.f32 %v781_v61, %v705_v56 }
 0x1af   :  { %v783_v4 = vpop.f32.mrf.mxu1 }
 0x1b0   :  { %945 = vst [vmem:[#allocation8 + $0x28] sm:$0xff] %v782_v3  ;;  %v784_v8 = vadd.f32 %v783_v4, %v707_v59 }
 0x1b2   :  { %950 = vst [vmem:[#allocation8 + $0x48] sm:$0xff] %v784_v8  ;;  %v852_v11 = vpop.f32.mrf.mxu0 }
 0x1b3   :  { %v929_v12 = vpop.f32.mrf.mxu1  ;;  %v853_v13 = vadd.f32 %v852_v11, %v467_v7 }
 0x1b4   :  { %v854_v14 = vpop.f32.mrf.mxu0 }
 0x1b5   :  { %v931_v15 = vpop.f32.mrf.mxu1  ;;  %v930_v16 = vadd.f32 %v929_v12, %v853_v13  ;;  %v855_v17 = vadd.f32 %v854_v14, %v471_v10 }
 0x1b6   :  { %v858_v18 = vpop.f32.mrf.mxu0 }
 0x1b7   :  { %v935_v19 = vpop.f32.mrf.mxu1  ;;  %948 = vst [vmem:[#allocation8 + $0x38] sm:$0xff] %v930_v16  ;;  %v932_v20 = vadd.f32 %v931_v15, %v855_v17  ;;  %v859_v21 = vadd.f32 %v858_v18, %v467_v7 }
 0x1b8   :  { %v860_v22 = vpop.f32.mrf.mxu0 }
 0x1b9   :  { %949 = vst [vmem:[#allocation8 + $0x40] sm:$0xff] %v932_v20  ;;  %v936_v23 = vadd.f32 %v935_v19, %v859_v21  ;;  %v861_v24 = vadd.f32 %v860_v22, %v471_v10  ;;  %v937_v63 = vpop.f32.mrf.mxu1 }
 0x1bb   :  { %951 = vst [vmem:[#allocation8 + $0x50] sm:$0xff] %v936_v23  ;;  %v938_v25 = vadd.f32 %v937_v63, %v861_v24 }
 0x1bd   :  { %952 = vst [vmem:[#allocation8 + $0x58] sm:$0xff] %v938_v25 }
 0x1be   :  { %1056 = shalt.err (!%p1053_p5)
}
 0x1bf   :  { %s1079_s4 = smov 384   ;;  %s1080_s5 = smov 24  }
 0x1c0   :  { %964 = dma.vmem_to_hbm [thread:$0]  %s959_s2, 1536, %s1152_s3, [#allocation4], %s1079_s4, %s1079_s4, %s1080_s5  }
 0x1c1   :  { %1069 = dma.done.wait [#allocation4], 1536  }
 0x1c2   :  { %1070 = vsyncadd [#allocation4], 4294965760 }
 0x1c3   :  { %968 = vsyncpa [#allocation3], 1 }
 0x1c4   :  { %969 = vsyncpa [#allocation6], 1 }
 0x1c5   :  { %970 = vsyncpa [#allocation4], 1 }

</bundles_post_ra>
